<compile_context>
chip_gen: v6e
topology: v6e:2x2x1
jax: 0.10.0
libtpu: 0.0.40
codegen_flags: <defaults>
</compile_context>

<pallas_src>
import functools

import jax
import jax.numpy as jnp
from jax.experimental import pallas as pl
from jax.experimental.pallas import tpu as pltpu


def _round_up(x, m):
    return (x + m - 1) // m * m


def _sage_conv_kernel(adj_ref, x_src_ref, x_self_ref, w_self_ref, w_neigh_ref,
                      b_ref, out_ref, acc_ref, *, apply_relu):
    """One (dest-tile, source-tile) step of a SAGEConv layer (mean aggregator)."""
    k = pl.program_id(1)

    @pl.when(k == 0)
    def _():
        acc_ref[...] = jnp.zeros_like(acc_ref)

    # Mean aggregation for this block pair: bf16 MXU inputs, f32 accumulation.
    acc_ref[...] += jnp.dot(adj_ref[...], x_src_ref[...],
                            preferred_element_type=jnp.float32)

    @pl.when(k == pl.num_programs(1) - 1)
    def _():
        # out = x_self @ W_self + neigh @ W_neigh + b   (epilogue, once per dest tile)
        out = jnp.dot(x_self_ref[...], w_self_ref[...],
                      preferred_element_type=jnp.float32)
        out += jnp.dot(acc_ref[...].astype(x_self_ref.dtype), w_neigh_ref[...],
                       preferred_element_type=jnp.float32)
        out += b_ref[...]
        if apply_relu:
            out = jnp.maximum(out, 0.0)
        out_ref[...] = out.astype(out_ref.dtype)


def sage_conv(adj_p16, x_p, w_self, w_neigh, bias, *, apply_relu, out_dtype,
              tile_n=256):
    """One SAGEConv layer as a single fused, source-tiled Pallas call.

    adj_p16: (N_p, N_p) bf16 row-normalized adjacency, zero-padded to tile_n.
    x_p:     (N_p, F_in_p) bf16 features, rows padded to N_p, lanes to 128*k.
    Returns (N_p, F_out_p) activations in `out_dtype` (padded lanes are zero).
    """
    n_p, f_in_p = x_p.shape
    f_in, f_out = w_self.shape
    f_out_p = _round_up(f_out, 128)

    # Zero-pad weights/bias: padded rows/cols keep padded lanes exactly zero, so
    # padding never changes the valid outputs.
    w_self_p = jnp.pad(w_self, ((0, f_in_p - f_in), (0, f_out_p - f_out))
                       ).astype(jnp.bfloat16)
    w_neigh_p = jnp.pad(w_neigh, ((0, f_in_p - f_in), (0, f_out_p - f_out))
                        ).astype(jnp.bfloat16)
    b_p = jnp.pad(bias.reshape(1, -1), ((0, 0), (0, f_out_p - f_out))
                  ).astype(jnp.float32)

    kernel = functools.partial(_sage_conv_kernel, apply_relu=apply_relu)
    n_tiles = n_p // tile_n

    grid_spec = pltpu.PrefetchScalarGridSpec(
        num_scalar_prefetch=0,
        # (destination-node tiles [parallel], source-node reduction tiles [arbitrary])
        grid=(n_tiles, n_tiles),
        in_specs=[
            # adjacency block for this (dest, source) tile pair -- streams each step
            pl.BlockSpec((tile_n, tile_n), lambda i, k: (i, k)),
            # source-node features for this reduction step
            pl.BlockSpec((tile_n, f_in_p), lambda i, k: (k, 0)),
            # self features of this dest tile (resident across the k loop)
            pl.BlockSpec((tile_n, f_in_p), lambda i, k: (i, 0)),
            # weights / bias, constant index -> loaded once, stay resident
            pl.BlockSpec((f_in_p, f_out_p), lambda i, k: (0, 0)),
            pl.BlockSpec((f_in_p, f_out_p), lambda i, k: (0, 0)),
            pl.BlockSpec((1, f_out_p), lambda i, k: (0, 0)),
        ],
        out_specs=pl.BlockSpec((tile_n, f_out_p), lambda i, k: (i, 0)),
        scratch_shapes=[pltpu.VMEM((tile_n, f_in_p), jnp.float32)],
    )

    return pl.pallas_call(
        kernel,
        out_shape=jax.ShapeDtypeStruct((n_p, f_out_p), out_dtype),
        grid_spec=grid_spec,
        compiler_params=pltpu.CompilerParams(
            dimension_semantics=("parallel", "arbitrary")),
    )(adj_p16, x_p, x_p, w_self_p, w_neigh_p, b_p)


def graphsage_forward(adj_norm, features, params, *, tile_n=256):
    """GraphSAGE.forward: stack of SAGEConv layers, relu(+dropout) between."""
    n = adj_norm.shape[0]
    n_p = _round_up(n, tile_n)
    # Zero-pad adjacency once (bf16): padded source columns contribute exactly 0;
    # padded destination rows are sliced off at the end.
    adj_p16 = jnp.pad(adj_norm, ((0, n_p - n), (0, n_p - n))).astype(jnp.bfloat16)

    # Pad features once (rows to n_p, lanes to 128*k) and cast to bf16 for the MXU.
    f_in = features.shape[1]
    f_in_p = _round_up(f_in, 128)
    x = jnp.pad(features, ((0, n_p - n), (0, f_in_p - f_in))).astype(jnp.bfloat16)

    num_layers = len(params)
    for i, (w_self, w_neigh, b) in enumerate(params):
        last = i == num_layers - 1
        x = sage_conv(adj_p16, x, w_self, w_neigh, b,
                      apply_relu=not last,
                      # hidden layers stay bf16 + padded -> fed straight back in
                      out_dtype=jnp.float32 if last else jnp.bfloat16,
                      tile_n=tile_n)
        # dropout between layers is identity in eval/inference mode
    num_classes = params[-1][0].shape[1]
    return jnp.squeeze(x[:n, :num_classes])


def graphsage_reference(adj_norm, features, params):
    """Pure-JAX reference with matching bf16-input / f32-accumulation numerics."""
    a16 = adj_norm.astype(jnp.bfloat16)
    h = features
    for i, (w_self, w_neigh, b) in enumerate(params):
        h16 = h.astype(jnp.bfloat16)
        neigh = jnp.dot(a16, h16, preferred_element_type=jnp.float32)
        out = (jnp.dot(h16, w_self.astype(jnp.bfloat16),
                       preferred_element_type=jnp.float32)
               + jnp.dot(neigh.astype(jnp.bfloat16), w_neigh.astype(jnp.bfloat16),
                         preferred_element_type=jnp.float32)
               + b)
        if i != len(params) - 1:
            out = jnp.maximum(out, 0.0)
        h = out
    return jnp.squeeze(h)


def init_graphsage_params(key, in_feats, hidden_dim, num_classes, num_layers,
                          use_bias=True):
    """Deterministic parameter init matching the layer shapes of GraphSAGE."""
    dims = [in_feats] + [hidden_dim] * (num_layers - 1) + [num_classes]
    params = []
    for li in range(num_layers):
        f_in, f_out = dims[li], dims[li + 1]
        key, k1, k2, k3 = jax.random.split(key, 4)
        scale = 1.0 / jnp.sqrt(jnp.float32(f_in))
        w_self = jax.random.uniform(k1, (f_in, f_out), jnp.float32, -scale, scale)
        w_neigh = jax.random.uniform(k2, (f_in, f_out), jnp.float32, -scale, scale)
        if use_bias:
            b = jax.random.uniform(k3, (f_out,), jnp.float32, -scale, scale)
        else:
            b = jnp.zeros((f_out,), jnp.float32)
        params.append((w_self, w_neigh, b))
    return params


def build_normalized_adjacency(key, n_nodes, edge_prob=0.1):
    """Random graph -> dense adjacency, row-normalized for mean aggregation."""
    a = (jax.random.uniform(key, (n_nodes, n_nodes)) < edge_prob).astype(jnp.float32)
    a = a * (1.0 - jnp.eye(n_nodes, dtype=jnp.float32))   # no self loops
    deg = jnp.sum(a, axis=1, keepdims=True)
    return a / jnp.maximum(deg, 1.0)


if __name__ == "__main__":
    # small, TPU-friendly shapes (2x2 grid per layer so the pipelined reduction
    # and the parallel dest-node axis are both exercised)
    N = 512            # number of nodes
    IN_FEATS = 32
    HIDDEN = 64
    NUM_CLASSES = 8
    NUM_LAYERS = 3
    USE_BIAS = True
    TILE_N = 256       # matches the 256-wide MXU on v6e/v7x; use 128 on v5e

    key = jax.random.PRNGKey(0)
    k_adj, k_feat, k_params = jax.random.split(key, 3)

    adj_norm = build_normalized_adjacency(k_adj, N)
    features = jax.random.normal(k_feat, (N, IN_FEATS), jnp.float32)
    params = init_graphsage_params(k_params, IN_FEATS, HIDDEN, NUM_CLASSES,
                                   NUM_LAYERS, USE_BIAS)

    fwd = jax.jit(functools.partial(graphsage_forward, tile_n=TILE_N))
    out = jax.block_until_ready(fwd(adj_norm, features, params))

    assert out.shape == (N, NUM_CLASSES), out.shape
    assert bool(jnp.all(jnp.isfinite(out)))

    ref = graphsage_reference(adj_norm, features, params)
    max_err = float(jnp.max(jnp.abs(out - ref)))
    assert max_err < 5e-2, f"max abs err vs reference: {max_err}"

    print("KERNEL_OK")
</pallas_src>

<mosaic_0001>
module attributes {stable_mosaic.version = 11 : i64} {
  func.func @_sage_conv_kernel(%arg0: i32, %arg1: i32, %arg2: memref<256x256xbf16, #tpu.memory_space<vmem>>, %arg3: memref<256x128xbf16, #tpu.memory_space<vmem>>, %arg4: memref<256x128xbf16, #tpu.memory_space<vmem>>, %arg5: memref<128x128xbf16, #tpu.memory_space<vmem>>, %arg6: memref<128x128xbf16, #tpu.memory_space<vmem>>, %arg7: memref<1x128xf32, #tpu.memory_space<vmem>>, %arg8: memref<256x128xbf16, #tpu.memory_space<vmem>>, %arg9: memref<256x128xf32, #tpu.memory_space<vmem>>) attributes {dimension_semantics = [#tpu.dimension_semantics<parallel>, #tpu.dimension_semantics<arbitrary>], iteration_bounds = array<i64: 2, 2>, scalar_prefetch = 0 : i64, scratch_operands = 1 : i64, tpu.core_type = #tpu.core_type<tc>, window_params = [{transform_indices = @transform_0, window_bounds = array<i64: 256, 256>}, {transform_indices = @transform_1, window_bounds = array<i64: 256, 128>}, {transform_indices = @transform_2, window_bounds = array<i64: 256, 128>}, {pipeline_mode = #tpu.pipeline_mode<synchronous>, transform_indices = @transform_3, window_bounds = array<i64: 128, 128>}, {pipeline_mode = #tpu.pipeline_mode<synchronous>, transform_indices = @transform_4, window_bounds = array<i64: 128, 128>}, {pipeline_mode = #tpu.pipeline_mode<synchronous>, transform_indices = @transform_5, window_bounds = array<i64: 1, 128>}, {transform_indices = @transform_6, window_bounds = array<i64: 256, 128>}]} {
    %c0_i32 = arith.constant 0 : i32
    %0 = arith.cmpi eq, %arg1, %c0_i32 : i32
    %1 = arith.extui %0 : i1 to i32
    %c0_i32_0 = arith.constant 0 : i32
    %2 = arith.cmpi ne, %1, %c0_i32_0 : i32
    scf.if %2 {
      %cst_9 = arith.constant 0.000000e+00 : f32
      %12 = vector.broadcast %cst_9 : f32 to vector<256x128xf32>
      %c0_10 = arith.constant 0 : index
      %c0_11 = arith.constant 0 : index
      %13 = vector.load %arg9[%c0_10, %c0_11] : memref<256x128xf32, #tpu.memory_space<vmem>>, vector<256x128xf32>
      tpu.vector_store %arg9[%c0_10, %c0_11], %12 {strides = array<i32>} : memref<256x128xf32, #tpu.memory_space<vmem>>, vector<256x128xf32>,
    } else {
    }
    %c0 = arith.constant 0 : index
    %c0_1 = arith.constant 0 : index
    %3 = vector.load %arg9[%c0, %c0_1] : memref<256x128xf32, #tpu.memory_space<vmem>>, vector<256x128xf32>
    %c0_2 = arith.constant 0 : index
    %c0_3 = arith.constant 0 : index
    %4 = vector.load %arg2[%c0_2, %c0_3] : memref<256x256xbf16, #tpu.memory_space<vmem>>, vector<256x256xbf16>
    %c0_4 = arith.constant 0 : index
    %c0_5 = arith.constant 0 : index
    %5 = vector.load %arg3[%c0_4, %c0_5] : memref<256x128xbf16, #tpu.memory_space<vmem>>, vector<256x128xbf16>
    %cst = arith.constant dense<0.000000e+00> : vector<256x128xf32>
    %6 = tpu.matmul %4, %5, %cst {dimension_numbers = #tpu.dot_dimension_numbers<[1], [0], [0], [1], [0, 0, 1, 1], [], []>} : vector<256x256xbf16>, vector<256x128xbf16>, vector<256x128xf32> -> vector<256x128xf32>
    %7 = arith.addf %3, %6 : vector<256x128xf32>
    %c0_6 = arith.constant 0 : index
    %c0_7 = arith.constant 0 : index
    %8 = vector.load %arg9[%c0_6, %c0_7] : memref<256x128xf32, #tpu.memory_space<vmem>>, vector<256x128xf32>
    tpu.vector_store %arg9[%c0_6, %c0_7], %7 {strides = array<i32>} : memref<256x128xf32, #tpu.memory_space<vmem>>, vector<256x128xf32>,
    %c1_i32 = arith.constant 1 : i32
    %9 = arith.cmpi eq, %arg1, %c1_i32 : i32
    %10 = arith.extui %9 : i1 to i32
    %c0_i32_8 = arith.constant 0 : i32
    %11 = arith.cmpi ne, %10, %c0_i32_8 : i32
    scf.if %11 {
      %c0_9 = arith.constant 0 : index
      %c0_10 = arith.constant 0 : index
      %12 = vector.load %arg4[%c0_9, %c0_10] : memref<256x128xbf16, #tpu.memory_space<vmem>>, vector<256x128xbf16>
      %c0_11 = arith.constant 0 : index
      %c0_12 = arith.constant 0 : index
      %13 = vector.load %arg5[%c0_11, %c0_12] : memref<128x128xbf16, #tpu.memory_space<vmem>>, vector<128x128xbf16>
      %cst_13 = arith.constant dense<0.000000e+00> : vector<256x128xf32>
      %14 = tpu.matmul %12, %13, %cst_13 {dimension_numbers = #tpu.dot_dimension_numbers<[1], [0], [0], [1], [0, 0, 1, 1], [], []>} : vector<256x128xbf16>, vector<128x128xbf16>, vector<256x128xf32> -> vector<256x128xf32>
      %c0_14 = arith.constant 0 : index
      %c0_15 = arith.constant 0 : index
      %15 = vector.load %arg9[%c0_14, %c0_15] : memref<256x128xf32, #tpu.memory_space<vmem>>, vector<256x128xf32>
      %16 = arith.truncf %15 : vector<256x128xf32> to vector<256x128xbf16>
      %c0_16 = arith.constant 0 : index
      %c0_17 = arith.constant 0 : index
      %17 = vector.load %arg6[%c0_16, %c0_17] : memref<128x128xbf16, #tpu.memory_space<vmem>>, vector<128x128xbf16>
      %cst_18 = arith.constant dense<0.000000e+00> : vector<256x128xf32>
      %18 = tpu.matmul %16, %17, %cst_18 {dimension_numbers = #tpu.dot_dimension_numbers<[1], [0], [0], [1], [0, 0, 1, 1], [], []>} : vector<256x128xbf16>, vector<128x128xbf16>, vector<256x128xf32> -> vector<256x128xf32>
      %19 = arith.addf %14, %18 : vector<256x128xf32>
      %c0_19 = arith.constant 0 : index
      %c0_20 = arith.constant 0 : index
      %20 = vector.load %arg7[%c0_19, %c0_20] : memref<1x128xf32, #tpu.memory_space<vmem>>, vector<1x128xf32>
      %21 = vector.broadcast %20 : vector<1x128xf32> to vector<256x128xf32>
      %22 = arith.addf %19, %21 : vector<256x128xf32>
      %cst_21 = arith.constant 0.000000e+00 : f32
      %23 = vector.broadcast %cst_21 : f32 to vector<256x128xf32>
      %24 = arith.maximumf %22, %23 : vector<256x128xf32>
      %25 = arith.truncf %24 : vector<256x128xf32> to vector<256x128xbf16>
      %c0_22 = arith.constant 0 : index
      %c0_23 = arith.constant 0 : index
      %26 = vector.load %arg8[%c0_22, %c0_23] : memref<256x128xbf16, #tpu.memory_space<vmem>>, vector<256x128xbf16>
      tpu.vector_store %arg8[%c0_22, %c0_23], %25 {strides = array<i32>} : memref<256x128xbf16, #tpu.memory_space<vmem>>, vector<256x128xbf16>,
    } else {
    }
    return
  }
  func.func @transform_0(%arg0: i32, %arg1: i32) -> (i32, i32) {
    %c0_i32 = arith.constant 0 : i32
    return %arg0, %arg1 : i32, i32
  }
  func.func @transform_1(%arg0: i32, %arg1: i32) -> (i32, i32) {
    %c0_i32 = arith.constant 0 : i32
    %c0_i32_0 = arith.constant 0 : i32
    return %arg1, %c0_i32 : i32, i32
  }
  func.func @transform_2(%arg0: i32, %arg1: i32) -> (i32, i32) {
    %c0_i32 = arith.constant 0 : i32
    %c0_i32_0 = arith.constant 0 : i32
    return %arg0, %c0_i32 : i32, i32
  }
  func.func @transform_3(%arg0: i32, %arg1: i32) -> (i32, i32) {
    %c0_i32 = arith.constant 0 : i32
    %c0_i32_0 = arith.constant 0 : i32
    %c0_i32_1 = arith.constant 0 : i32
    return %c0_i32, %c0_i32_0 : i32, i32
  }
  func.func @transform_4(%arg0: i32, %arg1: i32) -> (i32, i32) {
    %c0_i32 = arith.constant 0 : i32
    %c0_i32_0 = arith.constant 0 : i32
    %c0_i32_1 = arith.constant 0 : i32
    return %c0_i32, %c0_i32_0 : i32, i32
  }
  func.func @transform_5(%arg0: i32, %arg1: i32) -> (i32, i32) {
    %c0_i32 = arith.constant 0 : i32
    %c0_i32_0 = arith.constant 0 : i32
    %c0_i32_1 = arith.constant 0 : i32
    return %c0_i32, %c0_i32_0 : i32, i32
  }
  func.func @transform_6(%arg0: i32, %arg1: i32) -> (i32, i32) {
    %c0_i32 = arith.constant 0 : i32
    %c0_i32_0 = arith.constant 0 : i32
    return %arg0, %c0_i32 : i32, i32
  }
}

module attributes {stable_mosaic.version = 11 : i64} {
  func.func @_sage_conv_kernel(%arg0: i32, %arg1: i32, %arg2: memref<256x256xbf16, #tpu.memory_space<vmem>>, %arg3: memref<256x128xbf16, #tpu.memory_space<vmem>>, %arg4: memref<256x128xbf16, #tpu.memory_space<vmem>>, %arg5: memref<128x128xbf16, #tpu.memory_space<vmem>>, %arg6: memref<128x128xbf16, #tpu.memory_space<vmem>>, %arg7: memref<1x128xf32, #tpu.memory_space<vmem>>, %arg8: memref<256x128xf32, #tpu.memory_space<vmem>>, %arg9: memref<256x128xf32, #tpu.memory_space<vmem>>) attributes {dimension_semantics = [#tpu.dimension_semantics<parallel>, #tpu.dimension_semantics<arbitrary>], iteration_bounds = array<i64: 2, 2>, scalar_prefetch = 0 : i64, scratch_operands = 1 : i64, tpu.core_type = #tpu.core_type<tc>, window_params = [{transform_indices = @transform_0, window_bounds = array<i64: 256, 256>}, {transform_indices = @transform_1, window_bounds = array<i64: 256, 128>}, {transform_indices = @transform_2, window_bounds = array<i64: 256, 128>}, {pipeline_mode = #tpu.pipeline_mode<synchronous>, transform_indices = @transform_3, window_bounds = array<i64: 128, 128>}, {pipeline_mode = #tpu.pipeline_mode<synchronous>, transform_indices = @transform_4, window_bounds = array<i64: 128, 128>}, {pipeline_mode = #tpu.pipeline_mode<synchronous>, transform_indices = @transform_5, window_bounds = array<i64: 1, 128>}, {transform_indices = @transform_6, window_bounds = array<i64: 256, 128>}]} {
    %c0_i32 = arith.constant 0 : i32
    %0 = arith.cmpi eq, %arg1, %c0_i32 : i32
    %1 = arith.extui %0 : i1 to i32
    %c0_i32_0 = arith.constant 0 : i32
    %2 = arith.cmpi ne, %1, %c0_i32_0 : i32
    scf.if %2 {
      %cst_9 = arith.constant 0.000000e+00 : f32
      %12 = vector.broadcast %cst_9 : f32 to vector<256x128xf32>
      %c0_10 = arith.constant 0 : index
      %c0_11 = arith.constant 0 : index
      %13 = vector.load %arg9[%c0_10, %c0_11] : memref<256x128xf32, #tpu.memory_space<vmem>>, vector<256x128xf32>
      tpu.vector_store %arg9[%c0_10, %c0_11], %12 {strides = array<i32>} : memref<256x128xf32, #tpu.memory_space<vmem>>, vector<256x128xf32>,
    } else {
    }
    %c0 = arith.constant 0 : index
    %c0_1 = arith.constant 0 : index
    %3 = vector.load %arg9[%c0, %c0_1] : memref<256x128xf32, #tpu.memory_space<vmem>>, vector<256x128xf32>
    %c0_2 = arith.constant 0 : index
    %c0_3 = arith.constant 0 : index
    %4 = vector.load %arg2[%c0_2, %c0_3] : memref<256x256xbf16, #tpu.memory_space<vmem>>, vector<256x256xbf16>
    %c0_4 = arith.constant 0 : index
    %c0_5 = arith.constant 0 : index
    %5 = vector.load %arg3[%c0_4, %c0_5] : memref<256x128xbf16, #tpu.memory_space<vmem>>, vector<256x128xbf16>
    %cst = arith.constant dense<0.000000e+00> : vector<256x128xf32>
    %6 = tpu.matmul %4, %5, %cst {dimension_numbers = #tpu.dot_dimension_numbers<[1], [0], [0], [1], [0, 0, 1, 1], [], []>} : vector<256x256xbf16>, vector<256x128xbf16>, vector<256x128xf32> -> vector<256x128xf32>
    %7 = arith.addf %3, %6 : vector<256x128xf32>
    %c0_6 = arith.constant 0 : index
    %c0_7 = arith.constant 0 : index
    %8 = vector.load %arg9[%c0_6, %c0_7] : memref<256x128xf32, #tpu.memory_space<vmem>>, vector<256x128xf32>
    tpu.vector_store %arg9[%c0_6, %c0_7], %7 {strides = array<i32>} : memref<256x128xf32, #tpu.memory_space<vmem>>, vector<256x128xf32>,
    %c1_i32 = arith.constant 1 : i32
    %9 = arith.cmpi eq, %arg1, %c1_i32 : i32
    %10 = arith.extui %9 : i1 to i32
    %c0_i32_8 = arith.constant 0 : i32
    %11 = arith.cmpi ne, %10, %c0_i32_8 : i32
    scf.if %11 {
      %c0_9 = arith.constant 0 : index
      %c0_10 = arith.constant 0 : index
      %12 = vector.load %arg4[%c0_9, %c0_10] : memref<256x128xbf16, #tpu.memory_space<vmem>>, vector<256x128xbf16>
      %c0_11 = arith.constant 0 : index
      %c0_12 = arith.constant 0 : index
      %13 = vector.load %arg5[%c0_11, %c0_12] : memref<128x128xbf16, #tpu.memory_space<vmem>>, vector<128x128xbf16>
      %cst_13 = arith.constant dense<0.000000e+00> : vector<256x128xf32>
      %14 = tpu.matmul %12, %13, %cst_13 {dimension_numbers = #tpu.dot_dimension_numbers<[1], [0], [0], [1], [0, 0, 1, 1], [], []>} : vector<256x128xbf16>, vector<128x128xbf16>, vector<256x128xf32> -> vector<256x128xf32>
      %c0_14 = arith.constant 0 : index
      %c0_15 = arith.constant 0 : index
      %15 = vector.load %arg9[%c0_14, %c0_15] : memref<256x128xf32, #tpu.memory_space<vmem>>, vector<256x128xf32>
      %16 = arith.truncf %15 : vector<256x128xf32> to vector<256x128xbf16>
      %c0_16 = arith.constant 0 : index
      %c0_17 = arith.constant 0 : index
      %17 = vector.load %arg6[%c0_16, %c0_17] : memref<128x128xbf16, #tpu.memory_space<vmem>>, vector<128x128xbf16>
      %cst_18 = arith.constant dense<0.000000e+00> : vector<256x128xf32>
      %18 = tpu.matmul %16, %17, %cst_18 {dimension_numbers = #tpu.dot_dimension_numbers<[1], [0], [0], [1], [0, 0, 1, 1], [], []>} : vector<256x128xbf16>, vector<128x128xbf16>, vector<256x128xf32> -> vector<256x128xf32>
      %19 = arith.addf %14, %18 : vector<256x128xf32>
      %c0_19 = arith.constant 0 : index
      %c0_20 = arith.constant 0 : index
      %20 = vector.load %arg7[%c0_19, %c0_20] : memref<1x128xf32, #tpu.memory_space<vmem>>, vector<1x128xf32>
      %21 = vector.broadcast %20 : vector<1x128xf32> to vector<256x128xf32>
      %22 = arith.addf %19, %21 : vector<256x128xf32>
      %c0_21 = arith.constant 0 : index
      %c0_22 = arith.constant 0 : index
      %23 = vector.load %arg8[%c0_21, %c0_22] : memref<256x128xf32, #tpu.memory_space<vmem>>, vector<256x128xf32>
      tpu.vector_store %arg8[%c0_21, %c0_22], %22 {strides = array<i32>} : memref<256x128xf32, #tpu.memory_space<vmem>>, vector<256x128xf32>,
    } else {
    }
    return
  }
  func.func @transform_0(%arg0: i32, %arg1: i32) -> (i32, i32) {
    %c0_i32 = arith.constant 0 : i32
    return %arg0, %arg1 : i32, i32
  }
  func.func @transform_1(%arg0: i32, %arg1: i32) -> (i32, i32) {
    %c0_i32 = arith.constant 0 : i32
    %c0_i32_0 = arith.constant 0 : i32
    return %arg1, %c0_i32 : i32, i32
  }
  func.func @transform_2(%arg0: i32, %arg1: i32) -> (i32, i32) {
    %c0_i32 = arith.constant 0 : i32
    %c0_i32_0 = arith.constant 0 : i32
    return %arg0, %c0_i32 : i32, i32
  }
  func.func @transform_3(%arg0: i32, %arg1: i32) -> (i32, i32) {
    %c0_i32 = arith.constant 0 : i32
    %c0_i32_0 = arith.constant 0 : i32
    %c0_i32_1 = arith.constant 0 : i32
    return %c0_i32, %c0_i32_0 : i32, i32
  }
  func.func @transform_4(%arg0: i32, %arg1: i32) -> (i32, i32) {
    %c0_i32 = arith.constant 0 : i32
    %c0_i32_0 = arith.constant 0 : i32
    %c0_i32_1 = arith.constant 0 : i32
    return %c0_i32, %c0_i32_0 : i32, i32
  }
  func.func @transform_5(%arg0: i32, %arg1: i32) -> (i32, i32) {
    %c0_i32 = arith.constant 0 : i32
    %c0_i32_0 = arith.constant 0 : i32
    %c0_i32_1 = arith.constant 0 : i32
    return %c0_i32, %c0_i32_0 : i32, i32
  }
  func.func @transform_6(%arg0: i32, %arg1: i32) -> (i32, i32) {
    %c0_i32 = arith.constant 0 : i32
    %c0_i32_0 = arith.constant 0 : i32
    return %arg0, %c0_i32 : i32, i32
  }
}

</mosaic_0001>

<bundles_post_ra>
// kernel: graphsage_forward.5
= control target key start
LH: loop header
LB: loop body
LE: loop exit
PB: predicated region body
PF: predicated region fallthrough
CT: control target
= control target key end

     0   :  { %s2512_s21 = smov 0   ;;  %s2514_s22 = smov 0   ;;  %s2866_s0 = inlined_call_operand.vmem [shape: bf16[512,512], index: 0, kind: input, shape index: {}]   ;;  %s2867_s1 = inlined_call_operand.vmem [shape: bf16[512,128], index: 1, kind: input, shape index: {}, may-alias: {1,2}]   ;;  %s2868_s2 = inlined_call_operand.vmem [shape: bf16[512,128], index: 2, kind: input, shape index: {}, may-alias: {1,2}]   ;;  %s2869_s3 = inlined_call_operand.vmem [shape: bf16[128,128], index: 3, kind: input, shape index: {}]   ;;  %s2870_s4 = inlined_call_operand.vmem [shape: bf16[128,128], index: 4, kind: input, shape index: {}]   ;;  %s2871_s5 = inlined_call_operand.vmem [shape: f32[1,128], index: 5, kind: input, shape index: {}]   ;;  %s2872_s6 = inlined_call_operand.vmem [shape: f32[512,128], index: 6, kind: output, shape index: {}]  }
   0x1   :  { %s2516_s23 = smov 0   ;;  %s2518_s24 = smov 0  }
   0x2   :  { %s2520_s25 = smov 0   ;;  %s2522_s26 = smov 0  }
   0x3   :  { %s2524_s27 = smov 0  }
   0x4 LB: > { %s25_s28 = sadd.s32 1, %s2466_s25  ;;  %s28_s29 = sadd.s32 1, %s2470_s26  ;;  %s2474_s27 = sphi %s2524_s27, %s16_s27   ;;  %s2470_s26 = sphi %s2522_s26, %s2878_s26   ;;  %s2466_s25 = sphi %s2520_s25, %s2877_s25   ;;  %s2462_s24 = sphi %s2518_s24, %s2876_s24   ;;  %s2458_s23 = sphi %s2516_s23, %s2875_s23   ;;  %s2454_s22 = sphi %s2514_s22, %s2874_s22   ;;  %s2450_s21 = sphi %s2512_s21, %s2873_s21  }
   0x5   : > { %p26_p0 = scmp.ge.s32.totalorder %s25_s28, 2  ;;  %p44_p1 = scmp.ne.s32.totalorder %s2454_s22, %s2450_s21 }
   0x6   : > { %p45_p2 = scmp.eq.s32.totalorder %s2474_s27, 0  ;;  %s37_s9 = sadd.s32 1, %s2454_s22 }
   0x7   : > { %s2880_s28 = smov (%p26_p0, %s25_s28), 0  ;;  %s2882_s29 = smov (!%p26_p0, %s28_s29), %s2470_s26 }
   0x8   : > { %p46_p3 = por %p45_p2, %p44_p1  ;;  %p30_p4 = scmp.ge.s32.totalorder %s2882_s29, 2 }
   0x9   : > { %s33_s30 = ssub.s32 %s2466_s25, %s2880_s28  ;;  %p1895_p6 = scmp.ge.s32.totalorder %s2474_s27, 4 }
   0xa   : > { %s2884_s29 = smov (%p30_p4, %s2882_s29), 0 }
   0xb   : > { %s32_s7 = ssub.s32 %s2470_s26, %s2884_s29  ;;  %220 = sbr.rel (%p1895_p6) target bundleno = 39 (0x27), region = 28 }
   0xc   : > { %s34_s8 = sor.u32 %s33_s30, %s32_s7 }
   0xd   : > { %p35_p5 = scmp.eq.s32.totalorder %s34_s8, 0 }
   0xf   : > { %s2563_s10 = scalar_select %p35_p5, %s2454_s22, %s37_s9  }
  0x10   : > { %223 = sbr.rel (!%p46_p3) target bundleno = 39 (0x27), region = 32  ;;  %s225_s11 = sand.u32 (%p46_p3), 1, %s2454_s22  }
  0x11   : > { %s1898_s12 = sshll.u32 (%p46_p3), %s2466_s25, 1  ;;  %s1896_s13 = sshll.u32 (%p46_p3), %s225_s11, 8 }
  0x12   : > { %s1994_s14 = sshll.u32 (%p46_p3), %s2470_s26, 7  ;;  %s2577_s20 = scalar_lea.vmem (%p46_p3), [#allocation3], %s1896_s13 }
  0x13   : > { %s231_s15 = sadd.s32 (%p46_p3), %s1994_s14, %s1898_s12 }
  0x14   : > { %s1900_s16 = sshll.u32 (%p46_p3), %s231_s15, 2 }
  0x15   : > { %s2572_s19 = scalar_lea.vmem %s2866_s0, %s1900_s16 }
  0x16   : > { %v324_v0 = vld [vmem:[%s2572_s19] sm:$0xff]  ;;  %v326_v1 = vld [vmem:[%s2572_s19 + $0x10] sm:$0xff] }
  0x17   : > { %v328_v2 = vld [vmem:[%s2572_s19 + $0x20] sm:$0xff]  ;;  %325 = vst [vmem:[%s2577_s20] sm:$0xff] %v324_v0  ;;  %327 = vst [vmem:[%s2577_s20 + $0x8] sm:$0xff] %v326_v1  ;;  %v330_v3 = vld [vmem:[%s2572_s19 + $0x30] sm:$0xff] }
  0x18   : > { %329 = vst [vmem:[%s2577_s20 + $0x10] sm:$0xff] %v328_v2  ;;  %v332_v4 = vld [vmem:[%s2572_s19 + $0x40] sm:$0xff]  ;;  %v334_v5 = vld [vmem:[%s2572_s19 + $0x50] sm:$0xff]  ;;  %331 = vst [vmem:[%s2577_s20 + $0x18] sm:$0xff] %v330_v3 }
  0x19   : > { %333 = vst [vmem:[%s2577_s20 + $0x20] sm:$0xff] %v332_v4  ;;  %335 = vst [vmem:[%s2577_s20 + $0x28] sm:$0xff] %v334_v5  ;;  %v336_v6 = vld [vmem:[%s2572_s19 + $0x60] sm:$0xff]  ;;  %v338_v7 = vld [vmem:[%s2572_s19 + $0x70] sm:$0xff] }
  0x1a   : > { %v340_v8 = vld [vmem:[%s2572_s19 + $0x80] sm:$0xff]  ;;  %337 = vst [vmem:[%s2577_s20 + $0x30] sm:$0xff] %v336_v6  ;;  %339 = vst [vmem:[%s2577_s20 + $0x38] sm:$0xff] %v338_v7  ;;  %v342_v9 = vld [vmem:[%s2572_s19 + $0x90] sm:$0xff] }
  0x1b   : > { %341 = vst [vmem:[%s2577_s20 + $0x40] sm:$0xff] %v340_v8  ;;  %v344_v10 = vld [vmem:[%s2572_s19 + $0xa0] sm:$0xff]  ;;  %v346_v11 = vld [vmem:[%s2572_s19 + $0xb0] sm:$0xff]  ;;  %343 = vst [vmem:[%s2577_s20 + $0x48] sm:$0xff] %v342_v9 }
  0x1c   : > { %345 = vst [vmem:[%s2577_s20 + $0x50] sm:$0xff] %v344_v10  ;;  %347 = vst [vmem:[%s2577_s20 + $0x58] sm:$0xff] %v346_v11  ;;  %v348_v12 = vld [vmem:[%s2572_s19 + $0xc0] sm:$0xff]  ;;  %v350_v13 = vld [vmem:[%s2572_s19 + $0xd0] sm:$0xff] }
  0x1d   : > { %v352_v14 = vld [vmem:[%s2572_s19 + $0xe0] sm:$0xff]  ;;  %349 = vst [vmem:[%s2577_s20 + $0x60] sm:$0xff] %v348_v12  ;;  %351 = vst [vmem:[%s2577_s20 + $0x68] sm:$0xff] %v350_v13  ;;  %v354_v15 = vld [vmem:[%s2572_s19 + $0xf0] sm:$0xff] }
  0x1e   : > { %353 = vst [vmem:[%s2577_s20 + $0x70] sm:$0xff] %v352_v14  ;;  %v356_v16 = vld [vmem:[%s2572_s19 + $0x100] sm:$0xff]  ;;  %v358_v17 = vld [vmem:[%s2572_s19 + $0x110] sm:$0xff]  ;;  %355 = vst [vmem:[%s2577_s20 + $0x78] sm:$0xff] %v354_v15 }
  0x1f   : > { %357 = vst [vmem:[%s2577_s20 + $0x80] sm:$0xff] %v356_v16  ;;  %359 = vst [vmem:[%s2577_s20 + $0x88] sm:$0xff] %v358_v17  ;;  %v360_v18 = vld [vmem:[%s2572_s19 + $0x120] sm:$0xff]  ;;  %v362_v19 = vld [vmem:[%s2572_s19 + $0x130] sm:$0xff] }
  0x20   : > { %v364_v20 = vld [vmem:[%s2572_s19 + $0x140] sm:$0xff]  ;;  %361 = vst [vmem:[%s2577_s20 + $0x90] sm:$0xff] %v360_v18  ;;  %363 = vst [vmem:[%s2577_s20 + $0x98] sm:$0xff] %v362_v19  ;;  %v366_v21 = vld [vmem:[%s2572_s19 + $0x150] sm:$0xff] }
  0x21   : > { %365 = vst [vmem:[%s2577_s20 + $0xa0] sm:$0xff] %v364_v20  ;;  %v368_v22 = vld [vmem:[%s2572_s19 + $0x160] sm:$0xff]  ;;  %v370_v23 = vld [vmem:[%s2572_s19 + $0x170] sm:$0xff]  ;;  %367 = vst [vmem:[%s2577_s20 + $0xa8] sm:$0xff] %v366_v21 }
  0x22   : > { %369 = vst [vmem:[%s2577_s20 + $0xb0] sm:$0xff] %v368_v22  ;;  %371 = vst [vmem:[%s2577_s20 + $0xb8] sm:$0xff] %v370_v23  ;;  %v372_v24 = vld [vmem:[%s2572_s19 + $0x180] sm:$0xff]  ;;  %v374_v25 = vld [vmem:[%s2572_s19 + $0x190] sm:$0xff] }
  0x23   : > { %v376_v26 = vld [vmem:[%s2572_s19 + $0x1a0] sm:$0xff]  ;;  %373 = vst [vmem:[%s2577_s20 + $0xc0] sm:$0xff] %v372_v24  ;;  %375 = vst [vmem:[%s2577_s20 + $0xc8] sm:$0xff] %v374_v25  ;;  %v378_v27 = vld [vmem:[%s2572_s19 + $0x1b0] sm:$0xff] }
  0x24   : > { %377 = vst [vmem:[%s2577_s20 + $0xd0] sm:$0xff] %v376_v26  ;;  %v380_v28 = vld [vmem:[%s2572_s19 + $0x1c0] sm:$0xff]  ;;  %v382_v29 = vld [vmem:[%s2572_s19 + $0x1d0] sm:$0xff]  ;;  %379 = vst [vmem:[%s2577_s20 + $0xd8] sm:$0xff] %v378_v27 }
  0x25   : > { %381 = vst [vmem:[%s2577_s20 + $0xe0] sm:$0xff] %v380_v28  ;;  %383 = vst [vmem:[%s2577_s20 + $0xe8] sm:$0xff] %v382_v29  ;;  %v384_v30 = vld [vmem:[%s2572_s19 + $0x1e0] sm:$0xff]  ;;  %v386_v31 = vld [vmem:[%s2572_s19 + $0x1f0] sm:$0xff] }
  0x26   : > { %385 = vst [vmem:[%s2577_s20 + $0xf0] sm:$0xff] %v384_v30  ;;  %387 = vst [vmem:[%s2577_s20 + $0xf8] sm:$0xff] %v386_v31 }
  0x27 PF: > { %p1901_p7 = scmp.ge.s32.totalorder %s2474_s27, 1  ;;  %p410_p8 = scmp.lt.s32.totalorder %s2474_s27, 5 }
  0x29   : > { %p411_p9 = pnand %p1901_p7, %p410_p8 }
  0x2a   : > { %s417_s30 = sand.u32 (!%p411_p9), 1, %s2450_s21   ;;  %s1903_s7 = sshll.u32 (!%p411_p9), %s2458_s23, 5 }
  0x2b   : > { %414 = sbr.rel (%p411_p9) target bundleno = 661 (0x295), region = 78  ;;  %s1902_s8 = sshll.u32 (!%p411_p9), %s417_s30, 8 }
  0x2c   : > { %p459_p10 = scmp.lt.s32.totalorder (!%p411_p9), %s1903_s7, 63  ;;  %s1905_s9 = sshll.u32 (!%p411_p9), %s2462_s24, 5 }
  0x2d   : > { %p465_p11 = scmp.lt.s32.totalorder (!%p411_p9), %s1905_s9, 63  ;;  %s2660_s30 = scalar_lea.vmem (!%p411_p9), [#allocation3], %s1902_s8 }
  0x2e   : > { %p1909_p12 = scmp.ne.s32.totalorder (!%p411_p9), %s2458_s23, 0 }
  0x30   : > { %s2886_s7 = smov (!%p459_p10, %s1903_s7), 63  ;;  %s2888_s9 = smov (!%p465_p11, %s1905_s9), 63 }
  0x31   : > { %s1904_s11 = sshll.u32 %s2886_s7, 2  ;;  %s1906_s15 = sshll.u32 %s2888_s9, 2 }
  0x32   : > { %s2648_s14 = scalar_lea.vmem %s2867_s1, %s1904_s11  ;;  %s1908_s16 = sshll.u32 %s2888_s9, 3 }
  0x33   : > { %s2653_s19 = scalar_lea.vmem %s2868_s2, %s1906_s15  ;;  %s2658_s24 = scalar_lea.vmem %s2872_s6, %s1908_s16 }
  0x34   : > { %480 = sbr.rel (%p1909_p12) target bundleno = 74 (0x4a), region = 86 }
  0x39   : > { %v2476_v32 = vmov 0.0  }
  0x3a   : > { %481 = vst [vmem:[#allocation2 + $0xb0] sm:$0xff] %v2476_v32  ;;  %482 = vst [vmem:[#allocation2] sm:$0xff] %v2476_v32 }
  0x3b   : > { %483 = vst [vmem:[#allocation2 + $0xd8] sm:$0xff] %v2476_v32  ;;  %484 = vst [vmem:[#allocation2 + $0x18] sm:$0xff] %v2476_v32 }
  0x3c   : > { %485 = vst [vmem:[#allocation2 + $0x50] sm:$0xff] %v2476_v32  ;;  %486 = vst [vmem:[#allocation2 + $0x68] sm:$0xff] %v2476_v32 }
  0x3d   : > { %487 = vst [vmem:[#allocation2 + $0x30] sm:$0xff] %v2476_v32  ;;  %488 = vst [vmem:[#allocation2 + $0x48] sm:$0xff] %v2476_v32 }
  0x3e   : > { %489 = vst [vmem:[#allocation2 + $0x80] sm:$0xff] %v2476_v32  ;;  %490 = vst [vmem:[#allocation2 + $0x88] sm:$0xff] %v2476_v32 }
  0x3f   : > { %491 = vst [vmem:[#allocation2 + $0xe8] sm:$0xff] %v2476_v32  ;;  %492 = vst [vmem:[#allocation2 + $0xb8] sm:$0xff] %v2476_v32 }
  0x40   : > { %493 = vst [vmem:[#allocation2 + $0x60] sm:$0xff] %v2476_v32  ;;  %494 = vst [vmem:[#allocation2 + $0xf0] sm:$0xff] %v2476_v32 }
  0x41   : > { %495 = vst [vmem:[#allocation2 + $0x8] sm:$0xff] %v2476_v32  ;;  %496 = vst [vmem:[#allocation2 + $0x78] sm:$0xff] %v2476_v32 }
  0x42   : > { %497 = vst [vmem:[#allocation2 + $0x38] sm:$0xff] %v2476_v32  ;;  %498 = vst [vmem:[#allocation2 + $0x58] sm:$0xff] %v2476_v32 }
  0x43   : > { %499 = vst [vmem:[#allocation2 + $0x40] sm:$0xff] %v2476_v32  ;;  %500 = vst [vmem:[#allocation2 + $0xc8] sm:$0xff] %v2476_v32 }
  0x44   : > { %501 = vst [vmem:[#allocation2 + $0xe0] sm:$0xff] %v2476_v32  ;;  %502 = vst [vmem:[#allocation2 + $0x90] sm:$0xff] %v2476_v32 }
  0x45   : > { %503 = vst [vmem:[#allocation2 + $0x70] sm:$0xff] %v2476_v32  ;;  %504 = vst [vmem:[#allocation2 + $0xc0] sm:$0xff] %v2476_v32 }
  0x46   : > { %505 = vst [vmem:[#allocation2 + $0xa8] sm:$0xff] %v2476_v32  ;;  %506 = vst [vmem:[#allocation2 + $0xd0] sm:$0xff] %v2476_v32 }
  0x47   : > { %507 = vst [vmem:[#allocation2 + $0x10] sm:$0xff] %v2476_v32  ;;  %508 = vst [vmem:[#allocation2 + $0x28] sm:$0xff] %v2476_v32 }
  0x48   : > { %509 = vst [vmem:[#allocation2 + $0xa0] sm:$0xff] %v2476_v32  ;;  %510 = vst [vmem:[#allocation2 + $0xf8] sm:$0xff] %v2476_v32 }
  0x49   : > { %511 = vst [vmem:[#allocation2 + $0x20] sm:$0xff] %v2476_v32  ;;  %512 = vst [vmem:[#allocation2 + $0x98] sm:$0xff] %v2476_v32 }
  0x4a PF: > { %v2324_v33 = vld [vmem:[%s2648_s14 + $0x78] sm:$0xff]   ;;  %v2326_v35 = vld [vmem:[%s2648_s14 + $0x70] sm:$0xff]   ;;  %v2328_v37 = vld [vmem:[%s2648_s14 + $0x68] sm:$0xff]   ;;  %p1958_p13 = scmp.ne.s32.totalorder %s2458_s23, 1 }
  0x4b   : > { %v2325_v34 = vld [vmem:[%s2648_s14 + $0x38] sm:$0xff]   ;;  %1995 = vmatprep.subr.bf16.mxu0 %v2324_v33  ;;  %2251 = vmatprep.subr.bf16.mxu1 %v2324_v33  ;;  %v2327_v36 = vld [vmem:[%s2648_s14 + $0x30] sm:$0xff]   ;;  %v2329_v38 = vld [vmem:[%s2648_s14 + $0x28] sm:$0xff]  }
  0x4c   : > { %1996 = vmatpush3.bf16.msra.mxu0 %v2325_v34  ;;  %2259 = vmatpush3.bf16.msra.mxu1 %v2325_v34  ;;  %v2330_v39 = vld [vmem:[%s2648_s14 + $0x60] sm:$0xff]   ;;  %v2332_v41 = vld [vmem:[%s2648_s14 + $0x58] sm:$0xff]   ;;  %v2334_v43 = vld [vmem:[%s2648_s14 + $0x50] sm:$0xff]  }
  0x4d   : > { %1997 = vmatprep.subr.bf16.mxu0 %v2326_v35  ;;  %2252 = vmatprep.subr.bf16.mxu1 %v2326_v35  ;;  %v2331_v40 = vld [vmem:[%s2648_s14 + $0x20] sm:$0xff]   ;;  %v2333_v42 = vld [vmem:[%s2648_s14 + $0x18] sm:$0xff]   ;;  %v2335_v46 = vld [vmem:[%s2648_s14 + $0x10] sm:$0xff]  }
  0x4e   : > { %v2342_v44 = vld [vmem:[%s2660_s30 + $0x4] ss:$8 sps:$4 sm:$0xff]   ;;  %v2340_v51 = vld [vmem:[%s2660_s30] ss:$8 sps:$4 sm:$0xff]   ;;  %v2346_v53 = vld [vmem:[%s2660_s30 + $0x14] ss:$8 sps:$4 sm:$0xff]  }
  0x4f   : > { %v2345_v45 = vld [vmem:[%s2660_s30 + $0x84] ss:$8 sps:$4 sm:$0xff]   ;;  %897 = vmatprep.mubr.bf16.mxu0 %v2342_v44  ;;  %v2343_v52 = vld [vmem:[%s2660_s30 + $0x80] ss:$8 sps:$4 sm:$0xff]   ;;  %v2348_v54 = vld [vmem:[%s2660_s30 + $0x94] ss:$8 sps:$4 sm:$0xff]  }
  0x50   : > { %1998 = vmatpush3.bf16.msra.mxu0 %v2327_v36  ;;  %2260 = vmatpush3.bf16.msra.mxu1 %v2327_v36  ;;  %v2336_v47 = vld [vmem:[%s2648_s14 + $0x48] sm:$0xff]   ;;  %v2338_v49 = vld [vmem:[%s2648_s14 + $0x40] sm:$0xff]   ;;  %v2350_v55 = vld [vmem:[%s2660_s30 + $0x10] ss:$8 sps:$4 sm:$0xff]  }
  0x51   : > { %1999 = vmatprep.subr.bf16.mxu0 %v2328_v37  ;;  %2253 = vmatprep.subr.bf16.mxu1 %v2328_v37  ;;  %v2337_v48 = vld [vmem:[%s2648_s14 + $0x8] sm:$0xff]   ;;  %v2339_v50 = vld [vmem:[%s2648_s14] sm:$0xff]   ;;  %v2351_v56 = vld [vmem:[%s2660_s30 + $0x90] ss:$8 sps:$4 sm:$0xff]  }
  0x52   : > { %961 = vmatprep.mubr.bf16.mxu1 %v2345_v45  ;;  %v2352_v57 = vld [vmem:[%s2660_s30 + $0x24] ss:$8 sps:$4 sm:$0xff]   ;;  %v2356_v59 = vld [vmem:[%s2660_s30 + $0x20] ss:$8 sps:$4 sm:$0xff]   ;;  %v2358_v61 = vld [vmem:[%s2660_s30 + $0x34] ss:$8 sps:$4 sm:$0xff]  }
  0x53   : > { %v2354_v58 = vld [vmem:[%s2660_s30 + $0xa4] ss:$8 sps:$4 sm:$0xff]   ;;  %v2357_v60 = vld [vmem:[%s2660_s30 + $0xa0] ss:$8 sps:$4 sm:$0xff]   ;;  %v2360_v62 = vld [vmem:[%s2660_s30 + $0xb4] ss:$8 sps:$4 sm:$0xff]  }
  0x54   : > { %2000 = vmatpush3.bf16.msra.mxu0 %v2329_v38  ;;  %2261 = vmatpush3.bf16.msra.mxu1 %v2329_v38  ;;  %v2362_v63 = vld [vmem:[%s2660_s30 + $0x30] ss:$8 sps:$4 sm:$0xff]   ;;  %v2364_v1 = vld [vmem:[%s2660_s30 + $0x44] ss:$8 sps:$4 sm:$0xff]   ;;  %v2368_v3 = vld [vmem:[%s2660_s30 + $0x40] ss:$8 sps:$4 sm:$0xff]  }
  0x55   : > { %2001 = vmatprep.subr.bf16.mxu0 %v2330_v39  ;;  %2254 = vmatprep.subr.bf16.mxu1 %v2330_v39  ;;  %v2363_v0 = vld [vmem:[%s2660_s30 + $0xb0] ss:$8 sps:$4 sm:$0xff]   ;;  %v2366_v2 = vld [vmem:[%s2660_s30 + $0xc4] ss:$8 sps:$4 sm:$0xff]   ;;  %v2369_v4 = vld [vmem:[%s2660_s30 + $0xc0] ss:$8 sps:$4 sm:$0xff]  }
  0x56   : > { %v2370_v5 = vld [vmem:[%s2660_s30 + $0x54] ss:$8 sps:$4 sm:$0xff]   ;;  %v2374_v7 = vld [vmem:[%s2660_s30 + $0x50] ss:$8 sps:$4 sm:$0xff]   ;;  %v2376_v9 = vld [vmem:[%s2660_s30 + $0x64] ss:$8 sps:$4 sm:$0xff]  }
  0x57   : > { %v2372_v6 = vld [vmem:[%s2660_s30 + $0xd4] ss:$8 sps:$4 sm:$0xff]   ;;  %v2375_v8 = vld [vmem:[%s2660_s30 + $0xd0] ss:$8 sps:$4 sm:$0xff]   ;;  %v2378_v10 = vld [vmem:[%s2660_s30 + $0xe4] ss:$8 sps:$4 sm:$0xff]  }
  0x58   : > { %2002 = vmatpush3.bf16.msra.mxu0 %v2331_v40  ;;  %2262 = vmatpush3.bf16.msra.mxu1 %v2331_v40  ;;  %v2380_v11 = vld [vmem:[%s2660_s30 + $0x60] ss:$8 sps:$4 sm:$0xff]   ;;  %v2382_v13 = vld [vmem:[%s2660_s30 + $0x74] ss:$8 sps:$4 sm:$0xff]   ;;  %v2386_v15 = vld [vmem:[%s2660_s30 + $0x70] ss:$8 sps:$4 sm:$0xff]  }
  0x59   : > { %2003 = vmatprep.subr.bf16.mxu0 %v2332_v41  ;;  %2255 = vmatprep.subr.bf16.mxu1 %v2332_v41  ;;  %v2381_v12 = vld [vmem:[%s2660_s30 + $0xe0] ss:$8 sps:$4 sm:$0xff]   ;;  %v2384_v14 = vld [vmem:[%s2660_s30 + $0xf4] ss:$8 sps:$4 sm:$0xff]   ;;  %v2387_v16 = vld [vmem:[%s2660_s30 + $0xf0] ss:$8 sps:$4 sm:$0xff]  }
  0x5a   : > { %v513_v19 = vld [vmem:[#allocation2 + $0xb0] sm:$0xff]  ;;  %v529_v21 = vld [vmem:[#allocation2 + $0x38] sm:$0xff]  ;;  %v514_v29 = vld [vmem:[#allocation2] sm:$0xff] }
  0x5b   : > { %v530_v31 = vld [vmem:[#allocation2 + $0x58] sm:$0xff]  ;;  %v531_v41 = vld [vmem:[#allocation2 + $0x40] sm:$0xff] }
  0x5c   : > { %2004 = vmatpush3.bf16.msra.mxu0 %v2333_v42  ;;  %2263 = vmatpush3.bf16.msra.mxu1 %v2333_v42  ;;  %v515_v39 = vld [vmem:[#allocation2 + $0xd8] sm:$0xff] }
  0x5d   : > { %2005 = vmatprep.subr.bf16.mxu0 %v2334_v43  ;;  %2256 = vmatprep.subr.bf16.mxu1 %v2334_v43 }
  0x60   : > { %2006 = vmatpush3.bf16.msra.mxu0 %v2335_v46  ;;  %2264 = vmatpush3.bf16.msra.mxu1 %v2335_v46 }
  0x61   : > { %2007 = vmatprep.subr.bf16.mxu0 %v2336_v47  ;;  %2257 = vmatprep.subr.bf16.mxu1 %v2336_v47 }
  0x64   : > { %2008 = vmatpush3.bf16.msra.mxu0 %v2337_v48  ;;  %2265 = vmatpush3.bf16.msra.mxu1 %v2337_v48 }
  0x65   : > { %2009 = vmatprep.subr.bf16.mxu0 %v2338_v49  ;;  %2258 = vmatprep.subr.bf16.mxu1 %v2338_v49  ;;  %v516_v49 = vld [vmem:[#allocation2 + $0x18] sm:$0xff] }
  0x68   : > { %2010 = vmatpush3.bf16.msra.mxu0 %v2339_v50  ;;  %2266 = vmatpush3.bf16.msra.mxu1 %v2339_v50 }
  0x6b   : > { %898 = vmatmul.mubr.bf16.vlgmr.msra.gmra.mxu0 %v2340_v51  ;;  %962 = vmatmul.mubr.bf16.vlgmr.msra.gmra.mxu1 %v2343_v52  ;;  %v532_v51 = vld [vmem:[#allocation2 + $0xc8] sm:$0xff] }
  0x6c   : > { %905 = vmatprep.mubr.bf16.mxu0 %v2346_v53  ;;  %969 = vmatprep.mubr.bf16.mxu1 %v2348_v54 }
  0x73   : > { %906 = vmatmul.mubr.bf16.gmra.mxu0 %v2350_v55  ;;  %970 = vmatmul.mubr.bf16.gmra.mxu1 %v2351_v56 }
  0x74   : > { %913 = vmatprep.mubr.bf16.mxu0 %v2352_v57  ;;  %977 = vmatprep.mubr.bf16.mxu1 %v2354_v58 }
  0x7b   : > { %914 = vmatmul.mubr.bf16.gmra.mxu0 %v2356_v59  ;;  %978 = vmatmul.mubr.bf16.gmra.mxu1 %v2357_v60  ;;  %v517_v59 = vld [vmem:[#allocation2 + $0x50] sm:$0xff] }
  0x7c   : > { %921 = vmatprep.mubr.bf16.mxu0 %v2358_v61  ;;  %985 = vmatprep.mubr.bf16.mxu1 %v2360_v62  ;;  %v533_v61 = vld [vmem:[#allocation2 + $0xe0] sm:$0xff] }
  0x83   : > { %922 = vmatmul.mubr.bf16.gmra.mxu0 %v2362_v63  ;;  %986 = vmatmul.mubr.bf16.gmra.mxu1 %v2363_v0 }
  0x84   : > { %929 = vmatprep.mubr.bf16.mxu0 %v2364_v1  ;;  %993 = vmatprep.mubr.bf16.mxu1 %v2366_v2 }
  0x8b   : > { %930 = vmatmul.mubr.bf16.gmra.mxu0 %v2368_v3  ;;  %994 = vmatmul.mubr.bf16.gmra.mxu1 %v2369_v4 }
  0x8c   : > { %937 = vmatprep.mubr.bf16.mxu0 %v2370_v5  ;;  %1001 = vmatprep.mubr.bf16.mxu1 %v2372_v6  ;;  %v518_v5 = vld [vmem:[#allocation2 + $0x68] sm:$0xff] }
  0x93   : > { %938 = vmatmul.mubr.bf16.gmra.mxu0 %v2374_v7  ;;  %1002 = vmatmul.mubr.bf16.gmra.mxu1 %v2375_v8  ;;  %v534_v7 = vld [vmem:[#allocation2 + $0x90] sm:$0xff] }
  0x94   : > { %945 = vmatprep.mubr.bf16.mxu0 %v2376_v9  ;;  %1009 = vmatprep.mubr.bf16.mxu1 %v2378_v10 }
  0x9b   : > { %946 = vmatmul.mubr.bf16.gmra.mxu0 %v2380_v11  ;;  %1010 = vmatmul.mubr.bf16.gmra.mxu1 %v2381_v12 }
  0x9c   : > { %953 = vmatprep.mubr.bf16.mxu0 %v2382_v13  ;;  %1017 = vmatprep.mubr.bf16.mxu1 %v2384_v14 }
  0xa3   : > { %954 = vmatmul.mubr.bf16.gmra.mxu0 %v2386_v15  ;;  %1018 = vmatmul.mubr.bf16.gmra.mxu1 %v2387_v16  ;;  %v519_v15 = vld [vmem:[#allocation2 + $0x30] sm:$0xff] }
 0x12b   : > { %v2011_v17 = vpop.f32.mrf.mxu0  ;;  %v2059_v18 = vpop.f32.mrf.mxu1 }
 0x12d   : > { %v2012_v20 = vpop.f32.mrf.mxu0  ;;  %v2060_v22 = vpop.f32.mrf.mxu1 }
 0x12e   : > { %v2013_v23 = vadd.f32 %v2012_v20, %v2011_v17  ;;  %v2061_v24 = vadd.f32 %v2060_v22, %v2059_v18  ;;  %v535_v17 = vld [vmem:[#allocation2 + $0x70] sm:$0xff] }
 0x12f   : > { %v2014_v25 = vpop.f32.mrf.mxu0  ;;  %v2062_v26 = vpop.f32.mrf.mxu1 }
 0x130   : > { %v1026_v27 = vadd.f32 %v2013_v23, %v513_v19  ;;  %v1042_v28 = vadd.f32 %v2061_v24, %v529_v21 }
 0x131   : > { %v2015_v30 = vpop.f32.mrf.mxu0  ;;  %v2063_v32 = vpop.f32.mrf.mxu1 }
 0x132   : > { %1058 = vst [vmem:[#allocation2 + $0xb0] sm:$0xff] %v1026_v27  ;;  %1074 = vst [vmem:[#allocation2 + $0x38] sm:$0xff] %v1042_v28  ;;  %v2016_v33 = vadd.f32 %v2015_v30, %v2014_v25  ;;  %v2064_v34 = vadd.f32 %v2063_v32, %v2062_v26  ;;  %v520_v25 = vld [vmem:[#allocation2 + $0x48] sm:$0xff]  ;;  %v536_v27 = vld [vmem:[#allocation2 + $0xc0] sm:$0xff] }
 0x133   : > { %v2017_v35 = vpop.f32.mrf.mxu0  ;;  %v2065_v36 = vpop.f32.mrf.mxu1 }
 0x134   : > { %v1027_v37 = vadd.f32 %v2016_v33, %v514_v29  ;;  %v1043_v38 = vadd.f32 %v2064_v34, %v530_v31 }
 0x135   : > { %v2018_v40 = vpop.f32.mrf.mxu0  ;;  %v2066_v42 = vpop.f32.mrf.mxu1 }
 0x136   : > { %1059 = vst [vmem:[#allocation2] sm:$0xff] %v1027_v37  ;;  %1075 = vst [vmem:[#allocation2 + $0x58] sm:$0xff] %v1043_v38  ;;  %v2019_v43 = vadd.f32 %v2018_v40, %v2017_v35  ;;  %v2067_v44 = vadd.f32 %v2066_v42, %v2065_v36  ;;  %v521_v35 = vld [vmem:[#allocation2 + $0x80] sm:$0xff]  ;;  %v537_v37 = vld [vmem:[#allocation2 + $0xa8] sm:$0xff] }
 0x137   : > { %v2020_v45 = vpop.f32.mrf.mxu0  ;;  %v2068_v46 = vpop.f32.mrf.mxu1 }
 0x138   : > { %v1028_v47 = vadd.f32 %v2019_v43, %v515_v39  ;;  %v1044_v48 = vadd.f32 %v2067_v44, %v531_v41 }
 0x139   : > { %v2021_v50 = vpop.f32.mrf.mxu0  ;;  %v2069_v52 = vpop.f32.mrf.mxu1 }
 0x13a   : > { %1060 = vst [vmem:[#allocation2 + $0xd8] sm:$0xff] %v1028_v47  ;;  %1076 = vst [vmem:[#allocation2 + $0x40] sm:$0xff] %v1044_v48  ;;  %v2022_v53 = vadd.f32 %v2021_v50, %v2020_v45  ;;  %v2070_v54 = vadd.f32 %v2069_v52, %v2068_v46  ;;  %v522_v45 = vld [vmem:[#allocation2 + $0x88] sm:$0xff]  ;;  %v538_v47 = vld [vmem:[#allocation2 + $0xd0] sm:$0xff] }
 0x13b   : > { %v2023_v55 = vpop.f32.mrf.mxu0  ;;  %v2071_v56 = vpop.f32.mrf.mxu1 }
 0x13c   : > { %v1029_v57 = vadd.f32 %v2022_v53, %v516_v49  ;;  %v1045_v58 = vadd.f32 %v2070_v54, %v532_v51 }
 0x13d   : > { %v2024_v60 = vpop.f32.mrf.mxu0  ;;  %v2072_v62 = vpop.f32.mrf.mxu1 }
 0x13e   : > { %1061 = vst [vmem:[#allocation2 + $0x18] sm:$0xff] %v1029_v57  ;;  %1077 = vst [vmem:[#allocation2 + $0xc8] sm:$0xff] %v1045_v58  ;;  %v2025_v63 = vadd.f32 %v2024_v60, %v2023_v55  ;;  %v2073_v0 = vadd.f32 %v2072_v62, %v2071_v56  ;;  %v523_v55 = vld [vmem:[#allocation2 + $0xe8] sm:$0xff]  ;;  %v539_v57 = vld [vmem:[#allocation2 + $0x10] sm:$0xff] }
 0x13f   : > { %v2026_v1 = vpop.f32.mrf.mxu0  ;;  %v2074_v2 = vpop.f32.mrf.mxu1 }
 0x140   : > { %v1030_v3 = vadd.f32 %v2025_v63, %v517_v59  ;;  %v1046_v4 = vadd.f32 %v2073_v0, %v533_v61 }
 0x141   : > { %v2027_v6 = vpop.f32.mrf.mxu0  ;;  %v2075_v8 = vpop.f32.mrf.mxu1 }
 0x142   : > { %1062 = vst [vmem:[#allocation2 + $0x50] sm:$0xff] %v1030_v3  ;;  %1078 = vst [vmem:[#allocation2 + $0xe0] sm:$0xff] %v1046_v4  ;;  %v2028_v9 = vadd.f32 %v2027_v6, %v2026_v1  ;;  %v2076_v10 = vadd.f32 %v2075_v8, %v2074_v2  ;;  %v524_v1 = vld [vmem:[#allocation2 + $0xb8] sm:$0xff]  ;;  %v540_v3 = vld [vmem:[#allocation2 + $0x28] sm:$0xff] }
 0x143   : > { %v2029_v11 = vpop.f32.mrf.mxu0  ;;  %v2077_v12 = vpop.f32.mrf.mxu1 }
 0x144   : > { %v1031_v13 = vadd.f32 %v2028_v9, %v518_v5  ;;  %v1047_v14 = vadd.f32 %v2076_v10, %v534_v7 }
 0x145   : > { %v2030_v16 = vpop.f32.mrf.mxu0  ;;  %v2078_v18 = vpop.f32.mrf.mxu1 }
 0x146   : > { %1063 = vst [vmem:[#allocation2 + $0x68] sm:$0xff] %v1031_v13  ;;  %1079 = vst [vmem:[#allocation2 + $0x90] sm:$0xff] %v1047_v14  ;;  %v2031_v19 = vadd.f32 %v2030_v16, %v2029_v11  ;;  %v2079_v20 = vadd.f32 %v2078_v18, %v2077_v12  ;;  %v525_v11 = vld [vmem:[#allocation2 + $0x60] sm:$0xff] }
 0x147   : > { %v2032_v21 = vpop.f32.mrf.mxu0  ;;  %v2080_v22 = vpop.f32.mrf.mxu1  ;;  %v541_v13 = vld [vmem:[#allocation2 + $0xa0] sm:$0xff] }
 0x148   : > { %v1032_v23 = vadd.f32 %v2031_v19, %v519_v15  ;;  %v1048_v24 = vadd.f32 %v2079_v20, %v535_v17 }
 0x149   : > { %v2033_v26 = vpop.f32.mrf.mxu0  ;;  %v2081_v28 = vpop.f32.mrf.mxu1 }
 0x14a   : > { %1064 = vst [vmem:[#allocation2 + $0x30] sm:$0xff] %v1032_v23  ;;  %1080 = vst [vmem:[#allocation2 + $0x70] sm:$0xff] %v1048_v24  ;;  %v2034_v29 = vadd.f32 %v2033_v26, %v2032_v21  ;;  %v2082_v30 = vadd.f32 %v2081_v28, %v2080_v22  ;;  %v526_v21 = vld [vmem:[#allocation2 + $0xf0] sm:$0xff]  ;;  %v542_v23 = vld [vmem:[#allocation2 + $0xf8] sm:$0xff] }
 0x14b   : > { %v2035_v31 = vpop.f32.mrf.mxu0  ;;  %v2083_v32 = vpop.f32.mrf.mxu1 }
 0x14c   : > { %v1033_v33 = vadd.f32 %v2034_v29, %v520_v25  ;;  %v1049_v34 = vadd.f32 %v2082_v30, %v536_v27 }
 0x14d   : > { %v2036_v36 = vpop.f32.mrf.mxu0  ;;  %v2084_v38 = vpop.f32.mrf.mxu1 }
 0x14e   : > { %1065 = vst [vmem:[#allocation2 + $0x48] sm:$0xff] %v1033_v33  ;;  %1081 = vst [vmem:[#allocation2 + $0xc0] sm:$0xff] %v1049_v34  ;;  %v2037_v39 = vadd.f32 %v2036_v36, %v2035_v31  ;;  %v2085_v40 = vadd.f32 %v2084_v38, %v2083_v32  ;;  %v527_v31 = vld [vmem:[#allocation2 + $0x8] sm:$0xff]  ;;  %v543_v33 = vld [vmem:[#allocation2 + $0x20] sm:$0xff] }
 0x14f   : > { %v2038_v41 = vpop.f32.mrf.mxu0  ;;  %v2086_v42 = vpop.f32.mrf.mxu1 }
 0x150   : > { %v1034_v43 = vadd.f32 %v2037_v39, %v521_v35  ;;  %v1050_v44 = vadd.f32 %v2085_v40, %v537_v37 }
 0x151   : > { %v2039_v46 = vpop.f32.mrf.mxu0  ;;  %v2087_v48 = vpop.f32.mrf.mxu1 }
 0x152   : > { %1066 = vst [vmem:[#allocation2 + $0x80] sm:$0xff] %v1034_v43  ;;  %1082 = vst [vmem:[#allocation2 + $0xa8] sm:$0xff] %v1050_v44  ;;  %v2040_v49 = vadd.f32 %v2039_v46, %v2038_v41  ;;  %v2088_v50 = vadd.f32 %v2087_v48, %v2086_v42  ;;  %v528_v41 = vld [vmem:[#allocation2 + $0x78] sm:$0xff] }
 0x153   : > { %v2041_v51 = vpop.f32.mrf.mxu0  ;;  %v2089_v52 = vpop.f32.mrf.mxu1  ;;  %v544_v43 = vld [vmem:[#allocation2 + $0x98] sm:$0xff] }
 0x154   : > { %v1035_v53 = vadd.f32 %v2040_v49, %v522_v45  ;;  %v1051_v54 = vadd.f32 %v2088_v50, %v538_v47 }
 0x155   : > { %v2042_v56 = vpop.f32.mrf.mxu0  ;;  %v2090_v58 = vpop.f32.mrf.mxu1 }
 0x156   : > { %1067 = vst [vmem:[#allocation2 + $0x88] sm:$0xff] %v1035_v53  ;;  %1083 = vst [vmem:[#allocation2 + $0xd0] sm:$0xff] %v1051_v54  ;;  %v2043_v59 = vadd.f32 %v2042_v56, %v2041_v51  ;;  %v2091_v60 = vadd.f32 %v2090_v58, %v2089_v52 }
 0x157   : > { %v2044_v61 = vpop.f32.mrf.mxu0  ;;  %v2092_v62 = vpop.f32.mrf.mxu1 }
 0x158   : > { %v1036_v63 = vadd.f32 %v2043_v59, %v523_v55  ;;  %v1052_v0 = vadd.f32 %v2091_v60, %v539_v57 }
 0x159   : > { %v2045_v2 = vpop.f32.mrf.mxu0  ;;  %v2093_v4 = vpop.f32.mrf.mxu1 }
 0x15a   : > { %1068 = vst [vmem:[#allocation2 + $0xe8] sm:$0xff] %v1036_v63  ;;  %1084 = vst [vmem:[#allocation2 + $0x10] sm:$0xff] %v1052_v0  ;;  %v2046_v5 = vadd.f32 %v2045_v2, %v2044_v61  ;;  %v2094_v6 = vadd.f32 %v2093_v4, %v2092_v62 }
 0x15b   : > { %v2047_v7 = vpop.f32.mrf.mxu0  ;;  %v2095_v8 = vpop.f32.mrf.mxu1 }
 0x15c   : > { %v1037_v9 = vadd.f32 %v2046_v5, %v524_v1  ;;  %v1053_v10 = vadd.f32 %v2094_v6, %v540_v3 }
 0x15d   : > { %v2048_v12 = vpop.f32.mrf.mxu0  ;;  %v2096_v14 = vpop.f32.mrf.mxu1 }
 0x15e   : > { %1069 = vst [vmem:[#allocation2 + $0xb8] sm:$0xff] %v1037_v9  ;;  %1085 = vst [vmem:[#allocation2 + $0x28] sm:$0xff] %v1053_v10  ;;  %v2049_v15 = vadd.f32 %v2048_v12, %v2047_v7  ;;  %v2097_v16 = vadd.f32 %v2096_v14, %v2095_v8 }
 0x15f   : > { %v2050_v17 = vpop.f32.mrf.mxu0  ;;  %v2098_v18 = vpop.f32.mrf.mxu1 }
 0x160   : > { %v1038_v19 = vadd.f32 %v2049_v15, %v525_v11  ;;  %v1054_v20 = vadd.f32 %v2097_v16, %v541_v13 }
 0x161   : > { %v2051_v22 = vpop.f32.mrf.mxu0  ;;  %v2099_v24 = vpop.f32.mrf.mxu1 }
 0x162   : > { %1070 = vst [vmem:[#allocation2 + $0x60] sm:$0xff] %v1038_v19  ;;  %1086 = vst [vmem:[#allocation2 + $0xa0] sm:$0xff] %v1054_v20  ;;  %v2052_v25 = vadd.f32 %v2051_v22, %v2050_v17  ;;  %v2100_v26 = vadd.f32 %v2099_v24, %v2098_v18 }
 0x163   : > { %v2053_v27 = vpop.f32.mrf.mxu0  ;;  %v2101_v28 = vpop.f32.mrf.mxu1 }
 0x164   : > { %v1039_v29 = vadd.f32 %v2052_v25, %v526_v21  ;;  %v1055_v30 = vadd.f32 %v2100_v26, %v542_v23 }
 0x165   : > { %v2054_v32 = vpop.f32.mrf.mxu0  ;;  %v2102_v34 = vpop.f32.mrf.mxu1 }
 0x166   : > { %1071 = vst [vmem:[#allocation2 + $0xf0] sm:$0xff] %v1039_v29  ;;  %1087 = vst [vmem:[#allocation2 + $0xf8] sm:$0xff] %v1055_v30  ;;  %v2055_v35 = vadd.f32 %v2054_v32, %v2053_v27  ;;  %v2103_v36 = vadd.f32 %v2102_v34, %v2101_v28 }
 0x167   : > { %v2056_v37 = vpop.f32.mrf.mxu0  ;;  %v2104_v38 = vpop.f32.mrf.mxu1 }
 0x168   : > { %v1040_v39 = vadd.f32 %v2055_v35, %v527_v31  ;;  %v1056_v40 = vadd.f32 %v2103_v36, %v543_v33 }
 0x169   : > { %v2057_v42 = vpop.f32.mrf.mxu0  ;;  %v2105_v44 = vpop.f32.mrf.mxu1 }
 0x16a   : > { %1072 = vst [vmem:[#allocation2 + $0x8] sm:$0xff] %v1040_v39  ;;  %1088 = vst [vmem:[#allocation2 + $0x20] sm:$0xff] %v1056_v40  ;;  %v2058_v45 = vadd.f32 %v2057_v42, %v2056_v37  ;;  %v2106_v46 = vadd.f32 %v2105_v44, %v2104_v38  ;;  %1093 = sbr.rel (%p1958_p13) target bundleno = 661 (0x295), region = 90 }
 0x16c   : > { %v1041_v47 = vadd.f32 %v2058_v45, %v528_v41  ;;  %v1057_v48 = vadd.f32 %v2106_v46, %v544_v43 }
 0x16e   : > { %1073 = vst [vmem:[#allocation2 + $0x78] sm:$0xff] %v1041_v47  ;;  %1089 = vst [vmem:[#allocation2 + $0x98] sm:$0xff] %v1057_v48 }
 0x16f   : > { %v2388_v49 = vld [vmem:[%s2870_s4 + $0x38] sm:$0xff]   ;;  %v2390_v51 = vld [vmem:[%s2870_s4 + $0x30] sm:$0xff]   ;;  %v2392_v53 = vld [vmem:[%s2870_s4 + $0x28] sm:$0xff]  }
 0x170   : > { %v2389_v50 = vld [vmem:[%s2869_s3 + $0x38] sm:$0xff]   ;;  %2155 = vmatprep.subr.bf16.mxu0 %v2388_v49  ;;  %v2391_v52 = vld [vmem:[%s2869_s3 + $0x30] sm:$0xff]   ;;  %v2393_v54 = vld [vmem:[%s2869_s3 + $0x28] sm:$0xff]  }
 0x171   : > { %2203 = vmatprep.subr.bf16.mxu1 %v2389_v50  ;;  %2156 = vmatpush3.bf16.msra.mxu0 %v2388_v49  ;;  %v2394_v55 = vld [vmem:[%s2870_s4 + $0x20] sm:$0xff]   ;;  %v2396_v57 = vld [vmem:[%s2870_s4 + $0x18] sm:$0xff]   ;;  %v2398_v59 = vld [vmem:[%s2870_s4 + $0x10] sm:$0xff]  }
 0x172   : > { %2204 = vmatpush3.bf16.msra.mxu1 %v2389_v50  ;;  %2157 = vmatprep.subr.bf16.mxu0 %v2390_v51  ;;  %v2395_v56 = vld [vmem:[%s2869_s3 + $0x20] sm:$0xff]   ;;  %v2397_v58 = vld [vmem:[%s2869_s3 + $0x18] sm:$0xff]   ;;  %v1142_v60 = vld [vmem:[#allocation2 + $0xb0] sm:$0xff] }
 0x173   : > { %2205 = vmatprep.subr.bf16.mxu1 %v2391_v52  ;;  %v1143_v61 = vld [vmem:[#allocation2] sm:$0xff]  ;;  %v2399_v62 = vld [vmem:[%s2869_s3 + $0x10] sm:$0xff]   ;;  %v2400_v1 = vld [vmem:[%s2870_s4 + $0x8] sm:$0xff]  }
 0x174   : > { %v1174_v63 = vpack.c.bf16 %v1143_v61, %v1142_v60  ;;  %v2404_v0 = vld [vmem:[%s2653_s19] sm:$0xff]   ;;  %v2401_v2 = vld [vmem:[%s2869_s3 + $0x8] sm:$0xff]   ;;  %v1144_v5 = vld [vmem:[#allocation2 + $0xd8] sm:$0xff] }
 0x175   : > { %2158 = vmatpush3.bf16.msra.mxu0 %v2390_v51  ;;  %2219 = vmatprep.mubr.bf16.mxu1 %v2404_v0  ;;  %v2402_v3 = vld [vmem:[%s2870_s4] sm:$0xff]   ;;  %v1145_v6 = vld [vmem:[#allocation2 + $0x18] sm:$0xff]  ;;  %v1146_v7 = vld [vmem:[#allocation2 + $0x50] sm:$0xff] }
 0x176   : > { %2206 = vmatpush3.bf16.msra.mxu1 %v2391_v52  ;;  %2159 = vmatprep.subr.bf16.mxu0 %v2392_v53  ;;  %v2403_v4 = vld [vmem:[%s2869_s3] sm:$0xff]   ;;  %v1147_v8 = vld [vmem:[#allocation2 + $0x68] sm:$0xff]  ;;  %v1175_v9 = vpack.c.bf16 %v1145_v6, %v1144_v5  ;;  %v2406_v12 = vld [vmem:[%s2653_s19 + $0x10] sm:$0xff]  }
 0x177   : > { %2207 = vmatprep.subr.bf16.mxu1 %v2393_v54  ;;  %2171 = vmatprep.mubr.bf16.mxu0 %v1174_v63  ;;  %v2405_v10 = vld [vmem:[%s2653_s19 + $0x8] sm:$0xff]   ;;  %v1176_v11 = vpack.c.bf16 %v1147_v8, %v1146_v7  ;;  %v1148_v13 = vld [vmem:[#allocation2 + $0x30] sm:$0xff]  ;;  %v1150_v15 = vld [vmem:[#allocation2 + $0x80] sm:$0xff] }
 0x178   : > { %v1149_v14 = vld [vmem:[#allocation2 + $0x48] sm:$0xff]  ;;  %v2407_v18 = vld [vmem:[%s2653_s19 + $0x18] sm:$0xff]   ;;  %v2408_v20 = vld [vmem:[%s2653_s19 + $0x20] sm:$0xff]  }
 0x179   : > { %2160 = vmatpush3.bf16.msra.mxu0 %v2392_v53  ;;  %v1151_v16 = vld [vmem:[#allocation2 + $0x88] sm:$0xff]  ;;  %v1177_v17 = vpack.c.bf16 %v1149_v14, %v1148_v13  ;;  %v1153_v22 = vld [vmem:[#allocation2 + $0xb8] sm:$0xff]  ;;  %v1154_v23 = vld [vmem:[#allocation2 + $0x60] sm:$0xff] }
 0x17a   : > { %2208 = vmatpush3.bf16.msra.mxu1 %v2393_v54  ;;  %2161 = vmatprep.subr.bf16.mxu0 %v2394_v55  ;;  %v1178_v19 = vpack.c.bf16 %v1151_v16, %v1150_v15  ;;  %v1152_v21 = vld [vmem:[#allocation2 + $0xe8] sm:$0xff]  ;;  %v1155_v24 = vld [vmem:[#allocation2 + $0xf0] sm:$0xff]  ;;  %v1157_v30 = vld [vmem:[#allocation2 + $0x78] sm:$0xff] }
 0x17b   : > { %2209 = vmatprep.subr.bf16.mxu1 %v2395_v56  ;;  %v1179_v25 = vpack.c.bf16 %v1153_v22, %v1152_v21  ;;  %v2409_v26 = vld [vmem:[%s2653_s19 + $0x28] sm:$0xff]   ;;  %v1180_v27 = vpack.c.bf16 %v1155_v24, %v1154_v23  ;;  %v2410_v28 = vld [vmem:[%s2653_s19 + $0x30] sm:$0xff]   ;;  %v1158_v31 = vld [vmem:[#allocation2 + $0x38] sm:$0xff] }
 0x17c   : > { %v1156_v29 = vld [vmem:[#allocation2 + $0x8] sm:$0xff]  ;;  %v1159_v32 = vld [vmem:[#allocation2 + $0x58] sm:$0xff]  ;;  %v2412_v36 = vld [vmem:[%s2653_s19 + $0x40] sm:$0xff]  }
 0x17d   : > { %2162 = vmatpush3.bf16.msra.mxu0 %v2394_v55  ;;  %v1181_v33 = vpack.c.bf16 %v1157_v30, %v1156_v29  ;;  %v2411_v34 = vld [vmem:[%s2653_s19 + $0x38] sm:$0xff]   ;;  %v1182_v35 = vpack.c.bf16 %v1159_v32, %v1158_v31  ;;  %v1160_v37 = vld [vmem:[#allocation2 + $0x40] sm:$0xff]  ;;  %v1161_v38 = vld [vmem:[#allocation2 + $0xc8] sm:$0xff] }
 0x17e   : > { %2210 = vmatpush3.bf16.msra.mxu1 %v2395_v56  ;;  %2163 = vmatprep.subr.bf16.mxu0 %v2396_v57  ;;  %v1162_v39 = vld [vmem:[#allocation2 + $0xe0] sm:$0xff]  ;;  %v1163_v40 = vld [vmem:[#allocation2 + $0x90] sm:$0xff]  ;;  %v1183_v41 = vpack.c.bf16 %v1161_v38, %v1160_v37  ;;  %v2413_v42 = vld [vmem:[%s2653_s19 + $0x48] sm:$0xff]  }
 0x17f   : > { %2211 = vmatprep.subr.bf16.mxu1 %v2397_v58  ;;  %v1184_v43 = vpack.c.bf16 %v1163_v40, %v1162_v39  ;;  %v2414_v44 = vld [vmem:[%s2653_s19 + $0x50] sm:$0xff]   ;;  %v1165_v46 = vld [vmem:[#allocation2 + $0xc0] sm:$0xff]  ;;  %v1166_v47 = vld [vmem:[#allocation2 + $0xa8] sm:$0xff] }
 0x180   : > { %v1164_v45 = vld [vmem:[#allocation2 + $0x70] sm:$0xff]  ;;  %v2415_v50 = vld [vmem:[%s2653_s19 + $0x58] sm:$0xff]   ;;  %v2416_v52 = vld [vmem:[%s2653_s19 + $0x60] sm:$0xff]  }
 0x181   : > { %2164 = vmatpush3.bf16.msra.mxu0 %v2396_v57  ;;  %v1167_v48 = vld [vmem:[#allocation2 + $0xd0] sm:$0xff]  ;;  %v1185_v49 = vpack.c.bf16 %v1165_v46, %v1164_v45  ;;  %v1169_v54 = vld [vmem:[#allocation2 + $0x28] sm:$0xff]  ;;  %v1170_v55 = vld [vmem:[#allocation2 + $0xa0] sm:$0xff] }
 0x182   : > { %2212 = vmatpush3.bf16.msra.mxu1 %v2397_v58  ;;  %2165 = vmatprep.subr.bf16.mxu0 %v2398_v59  ;;  %v1186_v51 = vpack.c.bf16 %v1167_v48, %v1166_v47  ;;  %v1168_v53 = vld [vmem:[#allocation2 + $0x10] sm:$0xff]  ;;  %v1171_v56 = vld [vmem:[#allocation2 + $0xf8] sm:$0xff]  ;;  %v2417_v58 = vld [vmem:[%s2653_s19 + $0x68] sm:$0xff]  }
 0x183   : > { %2213 = vmatprep.subr.bf16.mxu1 %v2399_v62  ;;  %v1187_v57 = vpack.c.bf16 %v1169_v54, %v1168_v53  ;;  %v2418_v60 = vld [vmem:[%s2653_s19 + $0x70] sm:$0xff]   ;;  %v1172_v61 = vld [vmem:[#allocation2 + $0x20] sm:$0xff]  ;;  %v2419_v0 = vld [vmem:[%s2653_s19 + $0x78] sm:$0xff]  }
 0x185   : > { %2166 = vmatpush3.bf16.msra.mxu0 %v2398_v59  ;;  %v1188_v59 = vpack.c.bf16 %v1171_v56, %v1170_v55 }
 0x186   : > { %2214 = vmatpush3.bf16.msra.mxu1 %v2399_v62  ;;  %2167 = vmatprep.subr.bf16.mxu0 %v2400_v1  ;;  %v1173_v62 = vld [vmem:[#allocation2 + $0x98] sm:$0xff] }
 0x187   : > { %2215 = vmatprep.subr.bf16.mxu1 %v2401_v2  ;;  %v1189_v63 = vpack.c.bf16 %v1173_v62, %v1172_v61 }
 0x189   : > { %2168 = vmatpush3.bf16.msra.mxu0 %v2400_v1 }
 0x18a   : > { %2216 = vmatpush3.bf16.msra.mxu1 %v2401_v2  ;;  %2169 = vmatprep.subr.bf16.mxu0 %v2402_v3 }
 0x18b   : > { %2217 = vmatprep.subr.bf16.mxu1 %v2403_v4 }
 0x18d   : > { %2170 = vmatpush3.bf16.msra.mxu0 %v2402_v3  ;;  %v2779_v3 = vld [vmem:[%s2871_s5] ss:$0 sm:$0xff] }
 0x18e   : > { %2218 = vmatpush3.bf16.msra.mxu1 %v2403_v4 }
 0x190   : > { %2172 = vmatmul.mubr.bf16.vlgmr.msra.gmra.mxu0 %v1175_v9 }
 0x191   : > { %2220 = vmatmul.mubr.bf16.vlgmr.msra.gmra.mxu1 %v2405_v10  ;;  %2175 = vmatprep.mubr.bf16.mxu0 %v1176_v11 }
 0x192   : > { %2223 = vmatprep.mubr.bf16.mxu1 %v2406_v12 }
 0x198   : > { %2176 = vmatmul.mubr.bf16.gmra.mxu0 %v1177_v17 }
 0x199   : > { %2224 = vmatmul.mubr.bf16.gmra.mxu1 %v2407_v18  ;;  %2179 = vmatprep.mubr.bf16.mxu0 %v1178_v19 }
 0x19a   : > { %2227 = vmatprep.mubr.bf16.mxu1 %v2408_v20 }
 0x1a0   : > { %2180 = vmatmul.mubr.bf16.gmra.mxu0 %v1179_v25 }
 0x1a1   : > { %2228 = vmatmul.mubr.bf16.gmra.mxu1 %v2409_v26  ;;  %2183 = vmatprep.mubr.bf16.mxu0 %v1180_v27 }
 0x1a2   : > { %2231 = vmatprep.mubr.bf16.mxu1 %v2410_v28 }
 0x1a8   : > { %2184 = vmatmul.mubr.bf16.gmra.mxu0 %v1181_v33 }
 0x1a9   : > { %2232 = vmatmul.mubr.bf16.gmra.mxu1 %v2411_v34  ;;  %2187 = vmatprep.mubr.bf16.mxu0 %v1182_v35 }
 0x1aa   : > { %2235 = vmatprep.mubr.bf16.mxu1 %v2412_v36 }
 0x1b0   : > { %2188 = vmatmul.mubr.bf16.gmra.mxu0 %v1183_v41 }
 0x1b1   : > { %2236 = vmatmul.mubr.bf16.gmra.mxu1 %v2413_v42  ;;  %2191 = vmatprep.mubr.bf16.mxu0 %v1184_v43 }
 0x1b2   : > { %2239 = vmatprep.mubr.bf16.mxu1 %v2414_v44 }
 0x1b8   : > { %2192 = vmatmul.mubr.bf16.gmra.mxu0 %v1185_v49 }
 0x1b9   : > { %2240 = vmatmul.mubr.bf16.gmra.mxu1 %v2415_v50  ;;  %2195 = vmatprep.mubr.bf16.mxu0 %v1186_v51 }
 0x1ba   : > { %2243 = vmatprep.mubr.bf16.mxu1 %v2416_v52 }
 0x1c0   : > { %2196 = vmatmul.mubr.bf16.gmra.mxu0 %v1187_v57 }
 0x1c1   : > { %2244 = vmatmul.mubr.bf16.gmra.mxu1 %v2417_v58  ;;  %2199 = vmatprep.mubr.bf16.mxu0 %v1188_v59 }
 0x1c2   : > { %2247 = vmatprep.mubr.bf16.mxu1 %v2418_v60 }
 0x1c8   : > { %2200 = vmatmul.mubr.bf16.gmra.mxu0 %v1189_v63 }
 0x1c9   : > { %2248 = vmatmul.mubr.bf16.gmra.mxu1 %v2419_v0 }
 0x250   : > { %v2173_v1 = vpop.f32.mrf.mxu0 }
 0x251   : > { %v2221_v2 = vpop.f32.mrf.mxu1 }
 0x252   : > { %v1602_v4 = vadd.f32 %v2221_v2, %v2173_v1  ;;  %v1288_v5 = vpop.f32.mrf.mxu0 }
 0x253   : > { %v1593_v6 = vpop.f32.mrf.mxu1 }
 0x254   : > { %v1729_v7 = vadd.f32 %v2779_v3, %v1602_v4  ;;  %v1594_v8 = vadd.f32 %v1593_v6, %v1288_v5  ;;  %v2174_v9 = vpop.f32.mrf.mxu0 }
 0x255   : > { %v2222_v10 = vpop.f32.mrf.mxu1 }
 0x256   : > { %1761 = vst [vmem:[%s2658_s24 + $0x10] sm:$0xff] %v1729_v7  ;;  %v1727_v11 = vadd.f32 %v2779_v3, %v1594_v8  ;;  %v1605_v12 = vadd.f32 %v2222_v10, %v2174_v9  ;;  %v1291_v13 = vpop.f32.mrf.mxu0 }
 0x257   : > { %v1596_v14 = vpop.f32.mrf.mxu1 }
 0x258   : > { %1759 = vst [vmem:[%s2658_s24] sm:$0xff] %v1727_v11  ;;  %v1730_v15 = vadd.f32 %v2779_v3, %v1605_v12  ;;  %v1597_v16 = vadd.f32 %v1596_v14, %v1291_v13  ;;  %v2177_v17 = vpop.f32.mrf.mxu0 }
 0x259   : > { %v2225_v18 = vpop.f32.mrf.mxu1 }
 0x25a   : > { %1762 = vst [vmem:[%s2658_s24 + $0x18] sm:$0xff] %v1730_v15  ;;  %v1728_v19 = vadd.f32 %v2779_v3, %v1597_v16  ;;  %v1618_v20 = vadd.f32 %v2225_v18, %v2177_v17  ;;  %v1304_v21 = vpop.f32.mrf.mxu0 }
 0x25b   : > { %v1609_v22 = vpop.f32.mrf.mxu1 }
 0x25c   : > { %1760 = vst [vmem:[%s2658_s24 + $0x8] sm:$0xff] %v1728_v19  ;;  %v1733_v23 = vadd.f32 %v2779_v3, %v1618_v20  ;;  %v1610_v24 = vadd.f32 %v1609_v22, %v1304_v21  ;;  %v2178_v25 = vpop.f32.mrf.mxu0 }
 0x25d   : > { %v2226_v26 = vpop.f32.mrf.mxu1 }
 0x25e   : > { %1765 = vst [vmem:[%s2658_s24 + $0x30] sm:$0xff] %v1733_v23  ;;  %v1731_v27 = vadd.f32 %v2779_v3, %v1610_v24  ;;  %v1621_v28 = vadd.f32 %v2226_v26, %v2178_v25  ;;  %v1307_v29 = vpop.f32.mrf.mxu0 }
 0x25f   : > { %v1612_v30 = vpop.f32.mrf.mxu1 }
 0x260   : > { %1763 = vst [vmem:[%s2658_s24 + $0x20] sm:$0xff] %v1731_v27  ;;  %v1734_v31 = vadd.f32 %v2779_v3, %v1621_v28  ;;  %v1613_v32 = vadd.f32 %v1612_v30, %v1307_v29  ;;  %v2181_v33 = vpop.f32.mrf.mxu0 }
 0x261   : > { %v2229_v34 = vpop.f32.mrf.mxu1 }
 0x262   : > { %1766 = vst [vmem:[%s2658_s24 + $0x38] sm:$0xff] %v1734_v31  ;;  %v1732_v35 = vadd.f32 %v2779_v3, %v1613_v32  ;;  %v1634_v36 = vadd.f32 %v2229_v34, %v2181_v33  ;;  %v1320_v37 = vpop.f32.mrf.mxu0 }
 0x263   : > { %v1625_v38 = vpop.f32.mrf.mxu1 }
 0x264   : > { %1764 = vst [vmem:[%s2658_s24 + $0x28] sm:$0xff] %v1732_v35  ;;  %v1737_v39 = vadd.f32 %v2779_v3, %v1634_v36  ;;  %v1626_v40 = vadd.f32 %v1625_v38, %v1320_v37  ;;  %v2182_v41 = vpop.f32.mrf.mxu0 }
 0x265   : > { %v2230_v42 = vpop.f32.mrf.mxu1 }
 0x266   : > { %1769 = vst [vmem:[%s2658_s24 + $0x50] sm:$0xff] %v1737_v39  ;;  %v1735_v43 = vadd.f32 %v2779_v3, %v1626_v40  ;;  %v1637_v44 = vadd.f32 %v2230_v42, %v2182_v41  ;;  %v1323_v45 = vpop.f32.mrf.mxu0 }
 0x267   : > { %v1628_v46 = vpop.f32.mrf.mxu1 }
 0x268   : > { %1767 = vst [vmem:[%s2658_s24 + $0x40] sm:$0xff] %v1735_v43  ;;  %v1738_v47 = vadd.f32 %v2779_v3, %v1637_v44  ;;  %v1629_v48 = vadd.f32 %v1628_v46, %v1323_v45  ;;  %v2185_v49 = vpop.f32.mrf.mxu0 }
 0x269   : > { %v2233_v50 = vpop.f32.mrf.mxu1 }
 0x26a   : > { %1770 = vst [vmem:[%s2658_s24 + $0x58] sm:$0xff] %v1738_v47  ;;  %v1736_v51 = vadd.f32 %v2779_v3, %v1629_v48  ;;  %v1650_v52 = vadd.f32 %v2233_v50, %v2185_v49  ;;  %v1336_v53 = vpop.f32.mrf.mxu0 }
 0x26b   : > { %v1641_v54 = vpop.f32.mrf.mxu1 }
 0x26c   : > { %1768 = vst [vmem:[%s2658_s24 + $0x48] sm:$0xff] %v1736_v51  ;;  %v1741_v55 = vadd.f32 %v2779_v3, %v1650_v52  ;;  %v1642_v56 = vadd.f32 %v1641_v54, %v1336_v53  ;;  %v2186_v57 = vpop.f32.mrf.mxu0 }
 0x26d   : > { %v2234_v58 = vpop.f32.mrf.mxu1 }
 0x26e   : > { %1773 = vst [vmem:[%s2658_s24 + $0x70] sm:$0xff] %v1741_v55  ;;  %v1739_v59 = vadd.f32 %v2779_v3, %v1642_v56  ;;  %v1653_v60 = vadd.f32 %v2234_v58, %v2186_v57  ;;  %v1339_v61 = vpop.f32.mrf.mxu0 }
 0x26f   : > { %v1644_v62 = vpop.f32.mrf.mxu1 }
 0x270   : > { %1771 = vst [vmem:[%s2658_s24 + $0x60] sm:$0xff] %v1739_v59  ;;  %v1742_v63 = vadd.f32 %v2779_v3, %v1653_v60  ;;  %v1645_v0 = vadd.f32 %v1644_v62, %v1339_v61  ;;  %v2189_v1 = vpop.f32.mrf.mxu0 }
 0x271   : > { %v2237_v2 = vpop.f32.mrf.mxu1 }
 0x272   : > { %1774 = vst [vmem:[%s2658_s24 + $0x78] sm:$0xff] %v1742_v63  ;;  %v1740_v4 = vadd.f32 %v2779_v3, %v1645_v0  ;;  %v1666_v5 = vadd.f32 %v2237_v2, %v2189_v1  ;;  %v1352_v6 = vpop.f32.mrf.mxu0 }
 0x273   : > { %v1657_v7 = vpop.f32.mrf.mxu1 }
 0x274   : > { %1772 = vst [vmem:[%s2658_s24 + $0x68] sm:$0xff] %v1740_v4  ;;  %v1745_v8 = vadd.f32 %v2779_v3, %v1666_v5  ;;  %v1658_v9 = vadd.f32 %v1657_v7, %v1352_v6  ;;  %v2190_v10 = vpop.f32.mrf.mxu0 }
 0x275   : > { %v2238_v11 = vpop.f32.mrf.mxu1 }
 0x276   : > { %1777 = vst [vmem:[%s2658_s24 + $0x90] sm:$0xff] %v1745_v8  ;;  %v1743_v12 = vadd.f32 %v2779_v3, %v1658_v9  ;;  %v1669_v13 = vadd.f32 %v2238_v11, %v2190_v10  ;;  %v1355_v14 = vpop.f32.mrf.mxu0 }
 0x277   : > { %v1660_v15 = vpop.f32.mrf.mxu1 }
 0x278   : > { %1775 = vst [vmem:[%s2658_s24 + $0x80] sm:$0xff] %v1743_v12  ;;  %v1746_v16 = vadd.f32 %v2779_v3, %v1669_v13  ;;  %v1661_v17 = vadd.f32 %v1660_v15, %v1355_v14  ;;  %v2193_v18 = vpop.f32.mrf.mxu0 }
 0x279   : > { %v2241_v19 = vpop.f32.mrf.mxu1 }
 0x27a   : > { %1778 = vst [vmem:[%s2658_s24 + $0x98] sm:$0xff] %v1746_v16  ;;  %v1744_v20 = vadd.f32 %v2779_v3, %v1661_v17  ;;  %v1682_v21 = vadd.f32 %v2241_v19, %v2193_v18  ;;  %v1368_v22 = vpop.f32.mrf.mxu0 }
 0x27b   : > { %v1673_v23 = vpop.f32.mrf.mxu1 }
 0x27c   : > { %1776 = vst [vmem:[%s2658_s24 + $0x88] sm:$0xff] %v1744_v20  ;;  %v1749_v24 = vadd.f32 %v2779_v3, %v1682_v21  ;;  %v1674_v25 = vadd.f32 %v1673_v23, %v1368_v22  ;;  %v2194_v26 = vpop.f32.mrf.mxu0 }
 0x27d   : > { %v2242_v27 = vpop.f32.mrf.mxu1 }
 0x27e   : > { %1781 = vst [vmem:[%s2658_s24 + $0xb0] sm:$0xff] %v1749_v24  ;;  %v1747_v28 = vadd.f32 %v2779_v3, %v1674_v25  ;;  %v1685_v29 = vadd.f32 %v2242_v27, %v2194_v26  ;;  %v1371_v30 = vpop.f32.mrf.mxu0 }
 0x27f   : > { %v1676_v31 = vpop.f32.mrf.mxu1 }
 0x280   : > { %1779 = vst [vmem:[%s2658_s24 + $0xa0] sm:$0xff] %v1747_v28  ;;  %v1750_v32 = vadd.f32 %v2779_v3, %v1685_v29  ;;  %v1677_v33 = vadd.f32 %v1676_v31, %v1371_v30  ;;  %v2197_v34 = vpop.f32.mrf.mxu0 }
 0x281   : > { %v2245_v35 = vpop.f32.mrf.mxu1 }
 0x282   : > { %1782 = vst [vmem:[%s2658_s24 + $0xb8] sm:$0xff] %v1750_v32  ;;  %v1748_v36 = vadd.f32 %v2779_v3, %v1677_v33  ;;  %v1698_v37 = vadd.f32 %v2245_v35, %v2197_v34  ;;  %v1384_v38 = vpop.f32.mrf.mxu0 }
 0x283   : > { %v1689_v39 = vpop.f32.mrf.mxu1 }
 0x284   : > { %1780 = vst [vmem:[%s2658_s24 + $0xa8] sm:$0xff] %v1748_v36  ;;  %v1753_v40 = vadd.f32 %v2779_v3, %v1698_v37  ;;  %v1690_v41 = vadd.f32 %v1689_v39, %v1384_v38  ;;  %v2198_v42 = vpop.f32.mrf.mxu0 }
 0x285   : > { %v2246_v43 = vpop.f32.mrf.mxu1 }
 0x286   : > { %1785 = vst [vmem:[%s2658_s24 + $0xd0] sm:$0xff] %v1753_v40  ;;  %v1751_v44 = vadd.f32 %v2779_v3, %v1690_v41  ;;  %v1701_v45 = vadd.f32 %v2246_v43, %v2198_v42  ;;  %v1387_v46 = vpop.f32.mrf.mxu0 }
 0x287   : > { %v1692_v47 = vpop.f32.mrf.mxu1 }
 0x288   : > { %1783 = vst [vmem:[%s2658_s24 + $0xc0] sm:$0xff] %v1751_v44  ;;  %v1754_v48 = vadd.f32 %v2779_v3, %v1701_v45  ;;  %v1693_v49 = vadd.f32 %v1692_v47, %v1387_v46  ;;  %v2201_v50 = vpop.f32.mrf.mxu0 }
 0x289   : > { %v2249_v51 = vpop.f32.mrf.mxu1 }
 0x28a   : > { %1786 = vst [vmem:[%s2658_s24 + $0xd8] sm:$0xff] %v1754_v48  ;;  %v1752_v52 = vadd.f32 %v2779_v3, %v1693_v49  ;;  %v1714_v53 = vadd.f32 %v2249_v51, %v2201_v50  ;;  %v1400_v54 = vpop.f32.mrf.mxu0 }
 0x28b   : > { %v1705_v55 = vpop.f32.mrf.mxu1 }
 0x28c   : > { %1784 = vst [vmem:[%s2658_s24 + $0xc8] sm:$0xff] %v1752_v52  ;;  %v1757_v56 = vadd.f32 %v2779_v3, %v1714_v53  ;;  %v1706_v57 = vadd.f32 %v1705_v55, %v1400_v54  ;;  %v2202_v58 = vpop.f32.mrf.mxu0 }
 0x28d   : > { %v2250_v59 = vpop.f32.mrf.mxu1 }
 0x28e   : > { %1789 = vst [vmem:[%s2658_s24 + $0xf0] sm:$0xff] %v1757_v56  ;;  %v1755_v60 = vadd.f32 %v2779_v3, %v1706_v57  ;;  %v1717_v61 = vadd.f32 %v2250_v59, %v2202_v58  ;;  %v1403_v62 = vpop.f32.mrf.mxu0 }
 0x28f   : > { %v1708_v63 = vpop.f32.mrf.mxu1 }
 0x290   : > { %1787 = vst [vmem:[%s2658_s24 + $0xe0] sm:$0xff] %v1755_v60  ;;  %v1758_v0 = vadd.f32 %v2779_v3, %v1717_v61  ;;  %v1709_v1 = vadd.f32 %v1708_v63, %v1403_v62 }
 0x292   : > { %1790 = vst [vmem:[%s2658_s24 + $0xf8] sm:$0xff] %v1758_v0  ;;  %v1756_v2 = vadd.f32 %v2779_v3, %v1709_v1 }
 0x294   : > { %1788 = vst [vmem:[%s2658_s24 + $0xe8] sm:$0xff] %v1756_v2 }
 0x295 PF: > { %s16_s27 = sadd.s32 1, %s2474_s27   ;;  %s2873_s21 = smov %s2454_s22 }
 0x296   : > { %p13_p0 = scmp.ge.s32.totalorder %s16_s27, 6   ;;  %s2874_s22 = smov %s2563_s10 }
 0x297   : > { %s2875_s23 = smov %s2466_s25  ;;  %s2876_s24 = smov %s2470_s26 }
 0x298   : > { %s2877_s25 = smov %s2880_s28  ;;  %s2878_s26 = smov %s2884_s29 }
 0x299   :  { %15 = sbr.rel (!%p13_p0) target bundleno = 4 (0x4), region = 131 }

// kernel: graphsage_forward.3
= control target key start
LH: loop header
LB: loop body
LE: loop exit
PB: predicated region body
PF: predicated region fallthrough
CT: control target
= control target key end

     0   :  { %s2831_s21 = smov 0   ;;  %s2833_s22 = smov 0   ;;  %s3169_s0 = inlined_call_operand.vmem [shape: bf16[512,512], index: 0, kind: input, shape index: {}]   ;;  %s3170_s1 = inlined_call_operand.vmem [shape: bf16[512,128], index: 1, kind: input, shape index: {}, may-alias: {1,2}]   ;;  %s3171_s2 = inlined_call_operand.vmem [shape: bf16[512,128], index: 2, kind: input, shape index: {}, may-alias: {1,2}]   ;;  %s3172_s3 = inlined_call_operand.vmem [shape: bf16[128,128], index: 3, kind: input, shape index: {}]   ;;  %s3173_s4 = inlined_call_operand.vmem [shape: bf16[128,128], index: 4, kind: input, shape index: {}]   ;;  %s3174_s5 = inlined_call_operand.vmem [shape: f32[1,128], index: 5, kind: input, shape index: {}]   ;;  %s3175_s6 = inlined_call_operand.vmem [shape: bf16[512,128], index: 6, kind: output, shape index: {}]  }
   0x1   :  { %s2835_s23 = smov 0   ;;  %s2837_s24 = smov 0  }
   0x2   :  { %s2839_s25 = smov 0   ;;  %s2841_s26 = smov 0  }
   0x3   :  { %s2843_s27 = smov 0  }
   0x4 LB: > { %s25_s28 = sadd.s32 1, %s2785_s25  ;;  %s28_s29 = sadd.s32 1, %s2789_s26  ;;  %s2793_s27 = sphi %s2843_s27, %s16_s27   ;;  %s2789_s26 = sphi %s2841_s26, %s3181_s26   ;;  %s2785_s25 = sphi %s2839_s25, %s3180_s25   ;;  %s2781_s24 = sphi %s2837_s24, %s3179_s24   ;;  %s2777_s23 = sphi %s2835_s23, %s3178_s23   ;;  %s2773_s22 = sphi %s2833_s22, %s3177_s22   ;;  %s2769_s21 = sphi %s2831_s21, %s3176_s21  }
   0x5   : > { %p26_p0 = scmp.ge.s32.totalorder %s25_s28, 2  ;;  %p44_p1 = scmp.ne.s32.totalorder %s2773_s22, %s2769_s21 }
   0x6   : > { %p45_p2 = scmp.eq.s32.totalorder %s2793_s27, 0  ;;  %s37_s9 = sadd.s32 1, %s2773_s22 }
   0x7   : > { %s3183_s28 = smov (%p26_p0, %s25_s28), 0  ;;  %s3185_s29 = smov (!%p26_p0, %s28_s29), %s2789_s26 }
   0x8   : > { %p46_p3 = por %p45_p2, %p44_p1  ;;  %p30_p4 = scmp.ge.s32.totalorder %s3185_s29, 2 }
   0x9   : > { %s33_s30 = ssub.s32 %s2785_s25, %s3183_s28  ;;  %p2055_p6 = scmp.ge.s32.totalorder %s2793_s27, 4 }
   0xa   : > { %s3187_s29 = smov (%p30_p4, %s3185_s29), 0 }
   0xb   : > { %s32_s7 = ssub.s32 %s2789_s26, %s3187_s29  ;;  %220 = sbr.rel (%p2055_p6) target bundleno = 39 (0x27), region = 28 }
   0xc   : > { %s34_s8 = sor.u32 %s33_s30, %s32_s7 }
   0xd   : > { %p35_p5 = scmp.eq.s32.totalorder %s34_s8, 0 }
   0xf   : > { %s2882_s10 = scalar_select %p35_p5, %s2773_s22, %s37_s9  }
  0x10   : > { %223 = sbr.rel (!%p46_p3) target bundleno = 39 (0x27), region = 32  ;;  %s225_s11 = sand.u32 (%p46_p3), 1, %s2773_s22  }
  0x11   : > { %s2058_s12 = sshll.u32 (%p46_p3), %s2785_s25, 1  ;;  %s2056_s13 = sshll.u32 (%p46_p3), %s225_s11, 8 }
  0x12   : > { %s2186_s14 = sshll.u32 (%p46_p3), %s2789_s26, 7  ;;  %s2896_s20 = scalar_lea.vmem (%p46_p3), [#allocation3], %s2056_s13 }
  0x13   : > { %s231_s15 = sadd.s32 (%p46_p3), %s2186_s14, %s2058_s12 }
  0x14   : > { %s2060_s16 = sshll.u32 (%p46_p3), %s231_s15, 2 }
  0x15   : > { %s2891_s19 = scalar_lea.vmem %s3169_s0, %s2060_s16 }
  0x16   : > { %v324_v0 = vld [vmem:[%s2891_s19] sm:$0xff]  ;;  %v326_v1 = vld [vmem:[%s2891_s19 + $0x10] sm:$0xff] }
  0x17   : > { %v328_v2 = vld [vmem:[%s2891_s19 + $0x20] sm:$0xff]  ;;  %325 = vst [vmem:[%s2896_s20] sm:$0xff] %v324_v0  ;;  %327 = vst [vmem:[%s2896_s20 + $0x8] sm:$0xff] %v326_v1  ;;  %v330_v3 = vld [vmem:[%s2891_s19 + $0x30] sm:$0xff] }
  0x18   : > { %329 = vst [vmem:[%s2896_s20 + $0x10] sm:$0xff] %v328_v2  ;;  %v332_v4 = vld [vmem:[%s2891_s19 + $0x40] sm:$0xff]  ;;  %v334_v5 = vld [vmem:[%s2891_s19 + $0x50] sm:$0xff]  ;;  %331 = vst [vmem:[%s2896_s20 + $0x18] sm:$0xff] %v330_v3 }
  0x19   : > { %333 = vst [vmem:[%s2896_s20 + $0x20] sm:$0xff] %v332_v4  ;;  %335 = vst [vmem:[%s2896_s20 + $0x28] sm:$0xff] %v334_v5  ;;  %v336_v6 = vld [vmem:[%s2891_s19 + $0x60] sm:$0xff]  ;;  %v338_v7 = vld [vmem:[%s2891_s19 + $0x70] sm:$0xff] }
  0x1a   : > { %v340_v8 = vld [vmem:[%s2891_s19 + $0x80] sm:$0xff]  ;;  %337 = vst [vmem:[%s2896_s20 + $0x30] sm:$0xff] %v336_v6  ;;  %339 = vst [vmem:[%s2896_s20 + $0x38] sm:$0xff] %v338_v7  ;;  %v342_v9 = vld [vmem:[%s2891_s19 + $0x90] sm:$0xff] }
  0x1b   : > { %341 = vst [vmem:[%s2896_s20 + $0x40] sm:$0xff] %v340_v8  ;;  %v344_v10 = vld [vmem:[%s2891_s19 + $0xa0] sm:$0xff]  ;;  %v346_v11 = vld [vmem:[%s2891_s19 + $0xb0] sm:$0xff]  ;;  %343 = vst [vmem:[%s2896_s20 + $0x48] sm:$0xff] %v342_v9 }
  0x1c   : > { %345 = vst [vmem:[%s2896_s20 + $0x50] sm:$0xff] %v344_v10  ;;  %347 = vst [vmem:[%s2896_s20 + $0x58] sm:$0xff] %v346_v11  ;;  %v348_v12 = vld [vmem:[%s2891_s19 + $0xc0] sm:$0xff]  ;;  %v350_v13 = vld [vmem:[%s2891_s19 + $0xd0] sm:$0xff] }
  0x1d   : > { %v352_v14 = vld [vmem:[%s2891_s19 + $0xe0] sm:$0xff]  ;;  %349 = vst [vmem:[%s2896_s20 + $0x60] sm:$0xff] %v348_v12  ;;  %351 = vst [vmem:[%s2896_s20 + $0x68] sm:$0xff] %v350_v13  ;;  %v354_v15 = vld [vmem:[%s2891_s19 + $0xf0] sm:$0xff] }
  0x1e   : > { %353 = vst [vmem:[%s2896_s20 + $0x70] sm:$0xff] %v352_v14  ;;  %v356_v16 = vld [vmem:[%s2891_s19 + $0x100] sm:$0xff]  ;;  %v358_v17 = vld [vmem:[%s2891_s19 + $0x110] sm:$0xff]  ;;  %355 = vst [vmem:[%s2896_s20 + $0x78] sm:$0xff] %v354_v15 }
  0x1f   : > { %357 = vst [vmem:[%s2896_s20 + $0x80] sm:$0xff] %v356_v16  ;;  %359 = vst [vmem:[%s2896_s20 + $0x88] sm:$0xff] %v358_v17  ;;  %v360_v18 = vld [vmem:[%s2891_s19 + $0x120] sm:$0xff]  ;;  %v362_v19 = vld [vmem:[%s2891_s19 + $0x130] sm:$0xff] }
  0x20   : > { %v364_v20 = vld [vmem:[%s2891_s19 + $0x140] sm:$0xff]  ;;  %361 = vst [vmem:[%s2896_s20 + $0x90] sm:$0xff] %v360_v18  ;;  %363 = vst [vmem:[%s2896_s20 + $0x98] sm:$0xff] %v362_v19  ;;  %v366_v21 = vld [vmem:[%s2891_s19 + $0x150] sm:$0xff] }
  0x21   : > { %365 = vst [vmem:[%s2896_s20 + $0xa0] sm:$0xff] %v364_v20  ;;  %v368_v22 = vld [vmem:[%s2891_s19 + $0x160] sm:$0xff]  ;;  %v370_v23 = vld [vmem:[%s2891_s19 + $0x170] sm:$0xff]  ;;  %367 = vst [vmem:[%s2896_s20 + $0xa8] sm:$0xff] %v366_v21 }
  0x22   : > { %369 = vst [vmem:[%s2896_s20 + $0xb0] sm:$0xff] %v368_v22  ;;  %371 = vst [vmem:[%s2896_s20 + $0xb8] sm:$0xff] %v370_v23  ;;  %v372_v24 = vld [vmem:[%s2891_s19 + $0x180] sm:$0xff]  ;;  %v374_v25 = vld [vmem:[%s2891_s19 + $0x190] sm:$0xff] }
  0x23   : > { %v376_v26 = vld [vmem:[%s2891_s19 + $0x1a0] sm:$0xff]  ;;  %373 = vst [vmem:[%s2896_s20 + $0xc0] sm:$0xff] %v372_v24  ;;  %375 = vst [vmem:[%s2896_s20 + $0xc8] sm:$0xff] %v374_v25  ;;  %v378_v27 = vld [vmem:[%s2891_s19 + $0x1b0] sm:$0xff] }
  0x24   : > { %377 = vst [vmem:[%s2896_s20 + $0xd0] sm:$0xff] %v376_v26  ;;  %v380_v28 = vld [vmem:[%s2891_s19 + $0x1c0] sm:$0xff]  ;;  %v382_v29 = vld [vmem:[%s2891_s19 + $0x1d0] sm:$0xff]  ;;  %379 = vst [vmem:[%s2896_s20 + $0xd8] sm:$0xff] %v378_v27 }
  0x25   : > { %381 = vst [vmem:[%s2896_s20 + $0xe0] sm:$0xff] %v380_v28  ;;  %383 = vst [vmem:[%s2896_s20 + $0xe8] sm:$0xff] %v382_v29  ;;  %v384_v30 = vld [vmem:[%s2891_s19 + $0x1e0] sm:$0xff]  ;;  %v386_v31 = vld [vmem:[%s2891_s19 + $0x1f0] sm:$0xff] }
  0x26   : > { %385 = vst [vmem:[%s2896_s20 + $0xf0] sm:$0xff] %v384_v30  ;;  %387 = vst [vmem:[%s2896_s20 + $0xf8] sm:$0xff] %v386_v31 }
  0x27 PF: > { %p2061_p7 = scmp.ge.s32.totalorder %s2793_s27, 1  ;;  %p410_p8 = scmp.lt.s32.totalorder %s2793_s27, 5 }
  0x29   : > { %p411_p9 = pnand %p2061_p7, %p410_p8 }
  0x2a   : > { %s417_s30 = sand.u32 (!%p411_p9), 1, %s2769_s21   ;;  %s2063_s7 = sshll.u32 (!%p411_p9), %s2777_s23, 5 }
  0x2b   : > { %414 = sbr.rel (%p411_p9) target bundleno = 664 (0x298), region = 78  ;;  %s2062_s8 = sshll.u32 (!%p411_p9), %s417_s30, 8 }
  0x2c   : > { %p459_p10 = scmp.lt.s32.totalorder (!%p411_p9), %s2063_s7, 63  ;;  %s2065_s9 = sshll.u32 (!%p411_p9), %s2781_s24, 5 }
  0x2d   : > { %p465_p11 = scmp.lt.s32.totalorder (!%p411_p9), %s2065_s9, 63  ;;  %s2979_s24 = scalar_lea.vmem (!%p411_p9), [#allocation3], %s2062_s8 }
  0x2e   : > { %p2069_p12 = scmp.ne.s32.totalorder (!%p411_p9), %s2777_s23, 0 }
  0x30   : > { %s3189_s7 = smov (!%p459_p10, %s2063_s7), 63  ;;  %s3191_s9 = smov (!%p465_p11, %s2065_s9), 63 }
  0x31   : > { %s2064_s11 = sshll.u32 %s3189_s7, 2  ;;  %s2066_s15 = sshll.u32 %s3191_s9, 2 }
  0x32   : > { %s2967_s14 = scalar_lea.vmem %s3170_s1, %s2064_s11  ;;  %s2972_s18 = scalar_lea.vmem %s3171_s2, %s2066_s15 }
  0x33   : > { %s2977_s20 = scalar_lea.vmem %s3175_s6, %s2066_s15  ;;  %480 = sbr.rel (%p2069_p12) target bundleno = 73 (0x49), region = 86 }
  0x38   : > { %v2795_v32 = vmov 0.0  }
  0x39   : > { %481 = vst [vmem:[#allocation2 + $0xb0] sm:$0xff] %v2795_v32  ;;  %482 = vst [vmem:[#allocation2] sm:$0xff] %v2795_v32 }
  0x3a   : > { %483 = vst [vmem:[#allocation2 + $0xd8] sm:$0xff] %v2795_v32  ;;  %484 = vst [vmem:[#allocation2 + $0x18] sm:$0xff] %v2795_v32 }
  0x3b   : > { %485 = vst [vmem:[#allocation2 + $0x50] sm:$0xff] %v2795_v32  ;;  %486 = vst [vmem:[#allocation2 + $0x68] sm:$0xff] %v2795_v32 }
  0x3c   : > { %487 = vst [vmem:[#allocation2 + $0x30] sm:$0xff] %v2795_v32  ;;  %488 = vst [vmem:[#allocation2 + $0x48] sm:$0xff] %v2795_v32 }
  0x3d   : > { %489 = vst [vmem:[#allocation2 + $0x80] sm:$0xff] %v2795_v32  ;;  %490 = vst [vmem:[#allocation2 + $0x88] sm:$0xff] %v2795_v32 }
  0x3e   : > { %491 = vst [vmem:[#allocation2 + $0xe8] sm:$0xff] %v2795_v32  ;;  %492 = vst [vmem:[#allocation2 + $0xb8] sm:$0xff] %v2795_v32 }
  0x3f   : > { %493 = vst [vmem:[#allocation2 + $0x60] sm:$0xff] %v2795_v32  ;;  %494 = vst [vmem:[#allocation2 + $0xf0] sm:$0xff] %v2795_v32 }
  0x40   : > { %495 = vst [vmem:[#allocation2 + $0x8] sm:$0xff] %v2795_v32  ;;  %496 = vst [vmem:[#allocation2 + $0x78] sm:$0xff] %v2795_v32 }
  0x41   : > { %497 = vst [vmem:[#allocation2 + $0x38] sm:$0xff] %v2795_v32  ;;  %498 = vst [vmem:[#allocation2 + $0x58] sm:$0xff] %v2795_v32 }
  0x42   : > { %499 = vst [vmem:[#allocation2 + $0x40] sm:$0xff] %v2795_v32  ;;  %500 = vst [vmem:[#allocation2 + $0xc8] sm:$0xff] %v2795_v32 }
  0x43   : > { %501 = vst [vmem:[#allocation2 + $0xe0] sm:$0xff] %v2795_v32  ;;  %502 = vst [vmem:[#allocation2 + $0x90] sm:$0xff] %v2795_v32 }
  0x44   : > { %503 = vst [vmem:[#allocation2 + $0x70] sm:$0xff] %v2795_v32  ;;  %504 = vst [vmem:[#allocation2 + $0xc0] sm:$0xff] %v2795_v32 }
  0x45   : > { %505 = vst [vmem:[#allocation2 + $0xa8] sm:$0xff] %v2795_v32  ;;  %506 = vst [vmem:[#allocation2 + $0xd0] sm:$0xff] %v2795_v32 }
  0x46   : > { %507 = vst [vmem:[#allocation2 + $0x10] sm:$0xff] %v2795_v32  ;;  %508 = vst [vmem:[#allocation2 + $0x28] sm:$0xff] %v2795_v32 }
  0x47   : > { %509 = vst [vmem:[#allocation2 + $0xa0] sm:$0xff] %v2795_v32  ;;  %510 = vst [vmem:[#allocation2 + $0xf8] sm:$0xff] %v2795_v32 }
  0x48   : > { %511 = vst [vmem:[#allocation2 + $0x20] sm:$0xff] %v2795_v32  ;;  %512 = vst [vmem:[#allocation2 + $0x98] sm:$0xff] %v2795_v32 }
  0x49 PF: > { %v2643_v33 = vld [vmem:[%s2967_s14 + $0x78] sm:$0xff]   ;;  %v2645_v35 = vld [vmem:[%s2967_s14 + $0x70] sm:$0xff]   ;;  %v2647_v37 = vld [vmem:[%s2967_s14 + $0x68] sm:$0xff]   ;;  %p2118_p13 = scmp.ne.s32.totalorder %s2777_s23, 1 }
  0x4a   : > { %v2644_v34 = vld [vmem:[%s2967_s14 + $0x38] sm:$0xff]   ;;  %2314 = vmatprep.subr.bf16.mxu0 %v2643_v33  ;;  %2570 = vmatprep.subr.bf16.mxu1 %v2643_v33  ;;  %v2646_v36 = vld [vmem:[%s2967_s14 + $0x30] sm:$0xff]   ;;  %v2648_v38 = vld [vmem:[%s2967_s14 + $0x28] sm:$0xff]  }
  0x4b   : > { %2315 = vmatpush3.bf16.msra.mxu0 %v2644_v34  ;;  %2578 = vmatpush3.bf16.msra.mxu1 %v2644_v34  ;;  %v2649_v39 = vld [vmem:[%s2967_s14 + $0x60] sm:$0xff]   ;;  %v2651_v41 = vld [vmem:[%s2967_s14 + $0x58] sm:$0xff]   ;;  %v2653_v43 = vld [vmem:[%s2967_s14 + $0x50] sm:$0xff]  }
  0x4c   : > { %2316 = vmatprep.subr.bf16.mxu0 %v2645_v35  ;;  %2571 = vmatprep.subr.bf16.mxu1 %v2645_v35  ;;  %v2650_v40 = vld [vmem:[%s2967_s14 + $0x20] sm:$0xff]   ;;  %v2652_v42 = vld [vmem:[%s2967_s14 + $0x18] sm:$0xff]   ;;  %v2654_v46 = vld [vmem:[%s2967_s14 + $0x10] sm:$0xff]  }
  0x4d   : > { %v2661_v44 = vld [vmem:[%s2979_s24 + $0x4] ss:$8 sps:$4 sm:$0xff]   ;;  %v2659_v51 = vld [vmem:[%s2979_s24] ss:$8 sps:$4 sm:$0xff]   ;;  %v2665_v53 = vld [vmem:[%s2979_s24 + $0x14] ss:$8 sps:$4 sm:$0xff]  }
  0x4e   : > { %v2664_v45 = vld [vmem:[%s2979_s24 + $0x84] ss:$8 sps:$4 sm:$0xff]   ;;  %897 = vmatprep.mubr.bf16.mxu0 %v2661_v44  ;;  %v2662_v52 = vld [vmem:[%s2979_s24 + $0x80] ss:$8 sps:$4 sm:$0xff]   ;;  %v2667_v54 = vld [vmem:[%s2979_s24 + $0x94] ss:$8 sps:$4 sm:$0xff]  }
  0x4f   : > { %2317 = vmatpush3.bf16.msra.mxu0 %v2646_v36  ;;  %2579 = vmatpush3.bf16.msra.mxu1 %v2646_v36  ;;  %v2655_v47 = vld [vmem:[%s2967_s14 + $0x48] sm:$0xff]   ;;  %v2657_v49 = vld [vmem:[%s2967_s14 + $0x40] sm:$0xff]   ;;  %v2669_v55 = vld [vmem:[%s2979_s24 + $0x10] ss:$8 sps:$4 sm:$0xff]  }
  0x50   : > { %2318 = vmatprep.subr.bf16.mxu0 %v2647_v37  ;;  %2572 = vmatprep.subr.bf16.mxu1 %v2647_v37  ;;  %v2656_v48 = vld [vmem:[%s2967_s14 + $0x8] sm:$0xff]   ;;  %v2658_v50 = vld [vmem:[%s2967_s14] sm:$0xff]   ;;  %v2670_v56 = vld [vmem:[%s2979_s24 + $0x90] ss:$8 sps:$4 sm:$0xff]  }
  0x51   : > { %961 = vmatprep.mubr.bf16.mxu1 %v2664_v45  ;;  %v2671_v57 = vld [vmem:[%s2979_s24 + $0x24] ss:$8 sps:$4 sm:$0xff]   ;;  %v2675_v59 = vld [vmem:[%s2979_s24 + $0x20] ss:$8 sps:$4 sm:$0xff]   ;;  %v2677_v61 = vld [vmem:[%s2979_s24 + $0x34] ss:$8 sps:$4 sm:$0xff]  }
  0x52   : > { %v2673_v58 = vld [vmem:[%s2979_s24 + $0xa4] ss:$8 sps:$4 sm:$0xff]   ;;  %v2676_v60 = vld [vmem:[%s2979_s24 + $0xa0] ss:$8 sps:$4 sm:$0xff]   ;;  %v2679_v62 = vld [vmem:[%s2979_s24 + $0xb4] ss:$8 sps:$4 sm:$0xff]  }
  0x53   : > { %2319 = vmatpush3.bf16.msra.mxu0 %v2648_v38  ;;  %2580 = vmatpush3.bf16.msra.mxu1 %v2648_v38  ;;  %v2681_v63 = vld [vmem:[%s2979_s24 + $0x30] ss:$8 sps:$4 sm:$0xff]   ;;  %v2683_v1 = vld [vmem:[%s2979_s24 + $0x44] ss:$8 sps:$4 sm:$0xff]   ;;  %v2687_v3 = vld [vmem:[%s2979_s24 + $0x40] ss:$8 sps:$4 sm:$0xff]  }
  0x54   : > { %2320 = vmatprep.subr.bf16.mxu0 %v2649_v39  ;;  %2573 = vmatprep.subr.bf16.mxu1 %v2649_v39  ;;  %v2682_v0 = vld [vmem:[%s2979_s24 + $0xb0] ss:$8 sps:$4 sm:$0xff]   ;;  %v2685_v2 = vld [vmem:[%s2979_s24 + $0xc4] ss:$8 sps:$4 sm:$0xff]   ;;  %v2688_v4 = vld [vmem:[%s2979_s24 + $0xc0] ss:$8 sps:$4 sm:$0xff]  }
  0x55   : > { %v2689_v5 = vld [vmem:[%s2979_s24 + $0x54] ss:$8 sps:$4 sm:$0xff]   ;;  %v2693_v7 = vld [vmem:[%s2979_s24 + $0x50] ss:$8 sps:$4 sm:$0xff]   ;;  %v2695_v9 = vld [vmem:[%s2979_s24 + $0x64] ss:$8 sps:$4 sm:$0xff]  }
  0x56   : > { %v2691_v6 = vld [vmem:[%s2979_s24 + $0xd4] ss:$8 sps:$4 sm:$0xff]   ;;  %v2694_v8 = vld [vmem:[%s2979_s24 + $0xd0] ss:$8 sps:$4 sm:$0xff]   ;;  %v2697_v10 = vld [vmem:[%s2979_s24 + $0xe4] ss:$8 sps:$4 sm:$0xff]  }
  0x57   : > { %2321 = vmatpush3.bf16.msra.mxu0 %v2650_v40  ;;  %2581 = vmatpush3.bf16.msra.mxu1 %v2650_v40  ;;  %v2699_v11 = vld [vmem:[%s2979_s24 + $0x60] ss:$8 sps:$4 sm:$0xff]   ;;  %v2701_v13 = vld [vmem:[%s2979_s24 + $0x74] ss:$8 sps:$4 sm:$0xff]   ;;  %v2705_v15 = vld [vmem:[%s2979_s24 + $0x70] ss:$8 sps:$4 sm:$0xff]  }
  0x58   : > { %2322 = vmatprep.subr.bf16.mxu0 %v2651_v41  ;;  %2574 = vmatprep.subr.bf16.mxu1 %v2651_v41  ;;  %v2700_v12 = vld [vmem:[%s2979_s24 + $0xe0] ss:$8 sps:$4 sm:$0xff]   ;;  %v2703_v14 = vld [vmem:[%s2979_s24 + $0xf4] ss:$8 sps:$4 sm:$0xff]   ;;  %v2706_v16 = vld [vmem:[%s2979_s24 + $0xf0] ss:$8 sps:$4 sm:$0xff]  }
  0x59   : > { %v513_v19 = vld [vmem:[#allocation2 + $0xb0] sm:$0xff]  ;;  %v529_v21 = vld [vmem:[#allocation2 + $0x38] sm:$0xff]  ;;  %v514_v29 = vld [vmem:[#allocation2] sm:$0xff] }
  0x5a   : > { %v530_v31 = vld [vmem:[#allocation2 + $0x58] sm:$0xff]  ;;  %v531_v41 = vld [vmem:[#allocation2 + $0x40] sm:$0xff] }
  0x5b   : > { %2323 = vmatpush3.bf16.msra.mxu0 %v2652_v42  ;;  %2582 = vmatpush3.bf16.msra.mxu1 %v2652_v42  ;;  %v515_v39 = vld [vmem:[#allocation2 + $0xd8] sm:$0xff] }
  0x5c   : > { %2324 = vmatprep.subr.bf16.mxu0 %v2653_v43  ;;  %2575 = vmatprep.subr.bf16.mxu1 %v2653_v43 }
  0x5f   : > { %2325 = vmatpush3.bf16.msra.mxu0 %v2654_v46  ;;  %2583 = vmatpush3.bf16.msra.mxu1 %v2654_v46 }
  0x60   : > { %2326 = vmatprep.subr.bf16.mxu0 %v2655_v47  ;;  %2576 = vmatprep.subr.bf16.mxu1 %v2655_v47 }
  0x63   : > { %2327 = vmatpush3.bf16.msra.mxu0 %v2656_v48  ;;  %2584 = vmatpush3.bf16.msra.mxu1 %v2656_v48 }
  0x64   : > { %2328 = vmatprep.subr.bf16.mxu0 %v2657_v49  ;;  %2577 = vmatprep.subr.bf16.mxu1 %v2657_v49  ;;  %v516_v49 = vld [vmem:[#allocation2 + $0x18] sm:$0xff] }
  0x67   : > { %2329 = vmatpush3.bf16.msra.mxu0 %v2658_v50  ;;  %2585 = vmatpush3.bf16.msra.mxu1 %v2658_v50 }
  0x6a   : > { %898 = vmatmul.mubr.bf16.vlgmr.msra.gmra.mxu0 %v2659_v51  ;;  %962 = vmatmul.mubr.bf16.vlgmr.msra.gmra.mxu1 %v2662_v52  ;;  %v532_v51 = vld [vmem:[#allocation2 + $0xc8] sm:$0xff] }
  0x6b   : > { %905 = vmatprep.mubr.bf16.mxu0 %v2665_v53  ;;  %969 = vmatprep.mubr.bf16.mxu1 %v2667_v54 }
  0x72   : > { %906 = vmatmul.mubr.bf16.gmra.mxu0 %v2669_v55  ;;  %970 = vmatmul.mubr.bf16.gmra.mxu1 %v2670_v56 }
  0x73   : > { %913 = vmatprep.mubr.bf16.mxu0 %v2671_v57  ;;  %977 = vmatprep.mubr.bf16.mxu1 %v2673_v58 }
  0x7a   : > { %914 = vmatmul.mubr.bf16.gmra.mxu0 %v2675_v59  ;;  %978 = vmatmul.mubr.bf16.gmra.mxu1 %v2676_v60  ;;  %v517_v59 = vld [vmem:[#allocation2 + $0x50] sm:$0xff] }
  0x7b   : > { %921 = vmatprep.mubr.bf16.mxu0 %v2677_v61  ;;  %985 = vmatprep.mubr.bf16.mxu1 %v2679_v62  ;;  %v533_v61 = vld [vmem:[#allocation2 + $0xe0] sm:$0xff] }
  0x82   : > { %922 = vmatmul.mubr.bf16.gmra.mxu0 %v2681_v63  ;;  %986 = vmatmul.mubr.bf16.gmra.mxu1 %v2682_v0 }
  0x83   : > { %929 = vmatprep.mubr.bf16.mxu0 %v2683_v1  ;;  %993 = vmatprep.mubr.bf16.mxu1 %v2685_v2 }
  0x8a   : > { %930 = vmatmul.mubr.bf16.gmra.mxu0 %v2687_v3  ;;  %994 = vmatmul.mubr.bf16.gmra.mxu1 %v2688_v4 }
  0x8b   : > { %937 = vmatprep.mubr.bf16.mxu0 %v2689_v5  ;;  %1001 = vmatprep.mubr.bf16.mxu1 %v2691_v6  ;;  %v518_v5 = vld [vmem:[#allocation2 + $0x68] sm:$0xff] }
  0x92   : > { %938 = vmatmul.mubr.bf16.gmra.mxu0 %v2693_v7  ;;  %1002 = vmatmul.mubr.bf16.gmra.mxu1 %v2694_v8  ;;  %v534_v7 = vld [vmem:[#allocation2 + $0x90] sm:$0xff] }
  0x93   : > { %945 = vmatprep.mubr.bf16.mxu0 %v2695_v9  ;;  %1009 = vmatprep.mubr.bf16.mxu1 %v2697_v10 }
  0x9a   : > { %946 = vmatmul.mubr.bf16.gmra.mxu0 %v2699_v11  ;;  %1010 = vmatmul.mubr.bf16.gmra.mxu1 %v2700_v12 }
  0x9b   : > { %953 = vmatprep.mubr.bf16.mxu0 %v2701_v13  ;;  %1017 = vmatprep.mubr.bf16.mxu1 %v2703_v14 }
  0xa2   : > { %954 = vmatmul.mubr.bf16.gmra.mxu0 %v2705_v15  ;;  %1018 = vmatmul.mubr.bf16.gmra.mxu1 %v2706_v16  ;;  %v519_v15 = vld [vmem:[#allocation2 + $0x30] sm:$0xff] }
 0x12a   : > { %v2330_v17 = vpop.f32.mrf.mxu0  ;;  %v2378_v18 = vpop.f32.mrf.mxu1 }
 0x12c   : > { %v2331_v20 = vpop.f32.mrf.mxu0  ;;  %v2379_v22 = vpop.f32.mrf.mxu1 }
 0x12d   : > { %v2332_v23 = vadd.f32 %v2331_v20, %v2330_v17  ;;  %v2380_v24 = vadd.f32 %v2379_v22, %v2378_v18  ;;  %v535_v17 = vld [vmem:[#allocation2 + $0x70] sm:$0xff] }
 0x12e   : > { %v2333_v25 = vpop.f32.mrf.mxu0  ;;  %v2381_v26 = vpop.f32.mrf.mxu1 }
 0x12f   : > { %v1026_v27 = vadd.f32 %v2332_v23, %v513_v19  ;;  %v1042_v28 = vadd.f32 %v2380_v24, %v529_v21 }
 0x130   : > { %v2334_v30 = vpop.f32.mrf.mxu0  ;;  %v2382_v32 = vpop.f32.mrf.mxu1 }
 0x131   : > { %1058 = vst [vmem:[#allocation2 + $0xb0] sm:$0xff] %v1026_v27  ;;  %1074 = vst [vmem:[#allocation2 + $0x38] sm:$0xff] %v1042_v28  ;;  %v2335_v33 = vadd.f32 %v2334_v30, %v2333_v25  ;;  %v2383_v34 = vadd.f32 %v2382_v32, %v2381_v26  ;;  %v520_v25 = vld [vmem:[#allocation2 + $0x48] sm:$0xff]  ;;  %v536_v27 = vld [vmem:[#allocation2 + $0xc0] sm:$0xff] }
 0x132   : > { %v2336_v35 = vpop.f32.mrf.mxu0  ;;  %v2384_v36 = vpop.f32.mrf.mxu1 }
 0x133   : > { %v1027_v37 = vadd.f32 %v2335_v33, %v514_v29  ;;  %v1043_v38 = vadd.f32 %v2383_v34, %v530_v31 }
 0x134   : > { %v2337_v40 = vpop.f32.mrf.mxu0  ;;  %v2385_v42 = vpop.f32.mrf.mxu1 }
 0x135   : > { %1059 = vst [vmem:[#allocation2] sm:$0xff] %v1027_v37  ;;  %1075 = vst [vmem:[#allocation2 + $0x58] sm:$0xff] %v1043_v38  ;;  %v2338_v43 = vadd.f32 %v2337_v40, %v2336_v35  ;;  %v2386_v44 = vadd.f32 %v2385_v42, %v2384_v36  ;;  %v521_v35 = vld [vmem:[#allocation2 + $0x80] sm:$0xff]  ;;  %v537_v37 = vld [vmem:[#allocation2 + $0xa8] sm:$0xff] }
 0x136   : > { %v2339_v45 = vpop.f32.mrf.mxu0  ;;  %v2387_v46 = vpop.f32.mrf.mxu1 }
 0x137   : > { %v1028_v47 = vadd.f32 %v2338_v43, %v515_v39  ;;  %v1044_v48 = vadd.f32 %v2386_v44, %v531_v41 }
 0x138   : > { %v2340_v50 = vpop.f32.mrf.mxu0  ;;  %v2388_v52 = vpop.f32.mrf.mxu1 }
 0x139   : > { %1060 = vst [vmem:[#allocation2 + $0xd8] sm:$0xff] %v1028_v47  ;;  %1076 = vst [vmem:[#allocation2 + $0x40] sm:$0xff] %v1044_v48  ;;  %v2341_v53 = vadd.f32 %v2340_v50, %v2339_v45  ;;  %v2389_v54 = vadd.f32 %v2388_v52, %v2387_v46  ;;  %v522_v45 = vld [vmem:[#allocation2 + $0x88] sm:$0xff]  ;;  %v538_v47 = vld [vmem:[#allocation2 + $0xd0] sm:$0xff] }
 0x13a   : > { %v2342_v55 = vpop.f32.mrf.mxu0  ;;  %v2390_v56 = vpop.f32.mrf.mxu1 }
 0x13b   : > { %v1029_v57 = vadd.f32 %v2341_v53, %v516_v49  ;;  %v1045_v58 = vadd.f32 %v2389_v54, %v532_v51 }
 0x13c   : > { %v2343_v60 = vpop.f32.mrf.mxu0  ;;  %v2391_v62 = vpop.f32.mrf.mxu1 }
 0x13d   : > { %1061 = vst [vmem:[#allocation2 + $0x18] sm:$0xff] %v1029_v57  ;;  %1077 = vst [vmem:[#allocation2 + $0xc8] sm:$0xff] %v1045_v58  ;;  %v2344_v63 = vadd.f32 %v2343_v60, %v2342_v55  ;;  %v2392_v0 = vadd.f32 %v2391_v62, %v2390_v56  ;;  %v523_v55 = vld [vmem:[#allocation2 + $0xe8] sm:$0xff]  ;;  %v539_v57 = vld [vmem:[#allocation2 + $0x10] sm:$0xff] }
 0x13e   : > { %v2345_v1 = vpop.f32.mrf.mxu0  ;;  %v2393_v2 = vpop.f32.mrf.mxu1 }
 0x13f   : > { %v1030_v3 = vadd.f32 %v2344_v63, %v517_v59  ;;  %v1046_v4 = vadd.f32 %v2392_v0, %v533_v61 }
 0x140   : > { %v2346_v6 = vpop.f32.mrf.mxu0  ;;  %v2394_v8 = vpop.f32.mrf.mxu1 }
 0x141   : > { %1062 = vst [vmem:[#allocation2 + $0x50] sm:$0xff] %v1030_v3  ;;  %1078 = vst [vmem:[#allocation2 + $0xe0] sm:$0xff] %v1046_v4  ;;  %v2347_v9 = vadd.f32 %v2346_v6, %v2345_v1  ;;  %v2395_v10 = vadd.f32 %v2394_v8, %v2393_v2  ;;  %v524_v1 = vld [vmem:[#allocation2 + $0xb8] sm:$0xff]  ;;  %v540_v3 = vld [vmem:[#allocation2 + $0x28] sm:$0xff] }
 0x142   : > { %v2348_v11 = vpop.f32.mrf.mxu0  ;;  %v2396_v12 = vpop.f32.mrf.mxu1 }
 0x143   : > { %v1031_v13 = vadd.f32 %v2347_v9, %v518_v5  ;;  %v1047_v14 = vadd.f32 %v2395_v10, %v534_v7 }
 0x144   : > { %v2349_v16 = vpop.f32.mrf.mxu0  ;;  %v2397_v18 = vpop.f32.mrf.mxu1 }
 0x145   : > { %1063 = vst [vmem:[#allocation2 + $0x68] sm:$0xff] %v1031_v13  ;;  %1079 = vst [vmem:[#allocation2 + $0x90] sm:$0xff] %v1047_v14  ;;  %v2350_v19 = vadd.f32 %v2349_v16, %v2348_v11  ;;  %v2398_v20 = vadd.f32 %v2397_v18, %v2396_v12  ;;  %v525_v11 = vld [vmem:[#allocation2 + $0x60] sm:$0xff] }
 0x146   : > { %v2351_v21 = vpop.f32.mrf.mxu0  ;;  %v2399_v22 = vpop.f32.mrf.mxu1  ;;  %v541_v13 = vld [vmem:[#allocation2 + $0xa0] sm:$0xff] }
 0x147   : > { %v1032_v23 = vadd.f32 %v2350_v19, %v519_v15  ;;  %v1048_v24 = vadd.f32 %v2398_v20, %v535_v17 }
 0x148   : > { %v2352_v26 = vpop.f32.mrf.mxu0  ;;  %v2400_v28 = vpop.f32.mrf.mxu1 }
 0x149   : > { %1064 = vst [vmem:[#allocation2 + $0x30] sm:$0xff] %v1032_v23  ;;  %1080 = vst [vmem:[#allocation2 + $0x70] sm:$0xff] %v1048_v24  ;;  %v2353_v29 = vadd.f32 %v2352_v26, %v2351_v21  ;;  %v2401_v30 = vadd.f32 %v2400_v28, %v2399_v22  ;;  %v526_v21 = vld [vmem:[#allocation2 + $0xf0] sm:$0xff]  ;;  %v542_v23 = vld [vmem:[#allocation2 + $0xf8] sm:$0xff] }
 0x14a   : > { %v2354_v31 = vpop.f32.mrf.mxu0  ;;  %v2402_v32 = vpop.f32.mrf.mxu1 }
 0x14b   : > { %v1033_v33 = vadd.f32 %v2353_v29, %v520_v25  ;;  %v1049_v34 = vadd.f32 %v2401_v30, %v536_v27 }
 0x14c   : > { %v2355_v36 = vpop.f32.mrf.mxu0  ;;  %v2403_v38 = vpop.f32.mrf.mxu1 }
 0x14d   : > { %1065 = vst [vmem:[#allocation2 + $0x48] sm:$0xff] %v1033_v33  ;;  %1081 = vst [vmem:[#allocation2 + $0xc0] sm:$0xff] %v1049_v34  ;;  %v2356_v39 = vadd.f32 %v2355_v36, %v2354_v31  ;;  %v2404_v40 = vadd.f32 %v2403_v38, %v2402_v32  ;;  %v527_v31 = vld [vmem:[#allocation2 + $0x8] sm:$0xff]  ;;  %v543_v33 = vld [vmem:[#allocation2 + $0x20] sm:$0xff] }
 0x14e   : > { %v2357_v41 = vpop.f32.mrf.mxu0  ;;  %v2405_v42 = vpop.f32.mrf.mxu1 }
 0x14f   : > { %v1034_v43 = vadd.f32 %v2356_v39, %v521_v35  ;;  %v1050_v44 = vadd.f32 %v2404_v40, %v537_v37 }
 0x150   : > { %v2358_v46 = vpop.f32.mrf.mxu0  ;;  %v2406_v48 = vpop.f32.mrf.mxu1 }
 0x151   : > { %1066 = vst [vmem:[#allocation2 + $0x80] sm:$0xff] %v1034_v43  ;;  %1082 = vst [vmem:[#allocation2 + $0xa8] sm:$0xff] %v1050_v44  ;;  %v2359_v49 = vadd.f32 %v2358_v46, %v2357_v41  ;;  %v2407_v50 = vadd.f32 %v2406_v48, %v2405_v42  ;;  %v528_v41 = vld [vmem:[#allocation2 + $0x78] sm:$0xff] }
 0x152   : > { %v2360_v51 = vpop.f32.mrf.mxu0  ;;  %v2408_v52 = vpop.f32.mrf.mxu1  ;;  %v544_v43 = vld [vmem:[#allocation2 + $0x98] sm:$0xff] }
 0x153   : > { %v1035_v53 = vadd.f32 %v2359_v49, %v522_v45  ;;  %v1051_v54 = vadd.f32 %v2407_v50, %v538_v47 }
 0x154   : > { %v2361_v56 = vpop.f32.mrf.mxu0  ;;  %v2409_v58 = vpop.f32.mrf.mxu1 }
 0x155   : > { %1067 = vst [vmem:[#allocation2 + $0x88] sm:$0xff] %v1035_v53  ;;  %1083 = vst [vmem:[#allocation2 + $0xd0] sm:$0xff] %v1051_v54  ;;  %v2362_v59 = vadd.f32 %v2361_v56, %v2360_v51  ;;  %v2410_v60 = vadd.f32 %v2409_v58, %v2408_v52 }
 0x156   : > { %v2363_v61 = vpop.f32.mrf.mxu0  ;;  %v2411_v62 = vpop.f32.mrf.mxu1 }
 0x157   : > { %v1036_v63 = vadd.f32 %v2362_v59, %v523_v55  ;;  %v1052_v0 = vadd.f32 %v2410_v60, %v539_v57 }
 0x158   : > { %v2364_v2 = vpop.f32.mrf.mxu0  ;;  %v2412_v4 = vpop.f32.mrf.mxu1 }
 0x159   : > { %1068 = vst [vmem:[#allocation2 + $0xe8] sm:$0xff] %v1036_v63  ;;  %1084 = vst [vmem:[#allocation2 + $0x10] sm:$0xff] %v1052_v0  ;;  %v2365_v5 = vadd.f32 %v2364_v2, %v2363_v61  ;;  %v2413_v6 = vadd.f32 %v2412_v4, %v2411_v62 }
 0x15a   : > { %v2366_v7 = vpop.f32.mrf.mxu0  ;;  %v2414_v8 = vpop.f32.mrf.mxu1 }
 0x15b   : > { %v1037_v9 = vadd.f32 %v2365_v5, %v524_v1  ;;  %v1053_v10 = vadd.f32 %v2413_v6, %v540_v3 }
 0x15c   : > { %v2367_v12 = vpop.f32.mrf.mxu0  ;;  %v2415_v14 = vpop.f32.mrf.mxu1 }
 0x15d   : > { %1069 = vst [vmem:[#allocation2 + $0xb8] sm:$0xff] %v1037_v9  ;;  %1085 = vst [vmem:[#allocation2 + $0x28] sm:$0xff] %v1053_v10  ;;  %v2368_v15 = vadd.f32 %v2367_v12, %v2366_v7  ;;  %v2416_v16 = vadd.f32 %v2415_v14, %v2414_v8 }
 0x15e   : > { %v2369_v17 = vpop.f32.mrf.mxu0  ;;  %v2417_v18 = vpop.f32.mrf.mxu1 }
 0x15f   : > { %v1038_v19 = vadd.f32 %v2368_v15, %v525_v11  ;;  %v1054_v20 = vadd.f32 %v2416_v16, %v541_v13 }
 0x160   : > { %v2370_v22 = vpop.f32.mrf.mxu0  ;;  %v2418_v24 = vpop.f32.mrf.mxu1 }
 0x161   : > { %1070 = vst [vmem:[#allocation2 + $0x60] sm:$0xff] %v1038_v19  ;;  %1086 = vst [vmem:[#allocation2 + $0xa0] sm:$0xff] %v1054_v20  ;;  %v2371_v25 = vadd.f32 %v2370_v22, %v2369_v17  ;;  %v2419_v26 = vadd.f32 %v2418_v24, %v2417_v18 }
 0x162   : > { %v2372_v27 = vpop.f32.mrf.mxu0  ;;  %v2420_v28 = vpop.f32.mrf.mxu1 }
 0x163   : > { %v1039_v29 = vadd.f32 %v2371_v25, %v526_v21  ;;  %v1055_v30 = vadd.f32 %v2419_v26, %v542_v23 }
 0x164   : > { %v2373_v32 = vpop.f32.mrf.mxu0  ;;  %v2421_v34 = vpop.f32.mrf.mxu1 }
 0x165   : > { %1071 = vst [vmem:[#allocation2 + $0xf0] sm:$0xff] %v1039_v29  ;;  %1087 = vst [vmem:[#allocation2 + $0xf8] sm:$0xff] %v1055_v30  ;;  %v2374_v35 = vadd.f32 %v2373_v32, %v2372_v27  ;;  %v2422_v36 = vadd.f32 %v2421_v34, %v2420_v28 }
 0x166   : > { %v2375_v37 = vpop.f32.mrf.mxu0  ;;  %v2423_v38 = vpop.f32.mrf.mxu1 }
 0x167   : > { %v1040_v39 = vadd.f32 %v2374_v35, %v527_v31  ;;  %v1056_v40 = vadd.f32 %v2422_v36, %v543_v33 }
 0x168   : > { %v2376_v42 = vpop.f32.mrf.mxu0  ;;  %v2424_v44 = vpop.f32.mrf.mxu1 }
 0x169   : > { %1072 = vst [vmem:[#allocation2 + $0x8] sm:$0xff] %v1040_v39  ;;  %1088 = vst [vmem:[#allocation2 + $0x20] sm:$0xff] %v1056_v40  ;;  %v2377_v45 = vadd.f32 %v2376_v42, %v2375_v37  ;;  %v2425_v46 = vadd.f32 %v2424_v44, %v2423_v38  ;;  %1093 = sbr.rel (%p2118_p13) target bundleno = 664 (0x298), region = 90 }
 0x16b   : > { %v1041_v47 = vadd.f32 %v2377_v45, %v528_v41  ;;  %v1057_v48 = vadd.f32 %v2425_v46, %v544_v43 }
 0x16d   : > { %1073 = vst [vmem:[#allocation2 + $0x78] sm:$0xff] %v1041_v47  ;;  %1089 = vst [vmem:[#allocation2 + $0x98] sm:$0xff] %v1057_v48 }
 0x16e   : > { %v2707_v49 = vld [vmem:[%s3173_s4 + $0x38] sm:$0xff]   ;;  %v2709_v51 = vld [vmem:[%s3173_s4 + $0x30] sm:$0xff]   ;;  %v2711_v53 = vld [vmem:[%s3173_s4 + $0x28] sm:$0xff]  }
 0x16f   : > { %v2708_v50 = vld [vmem:[%s3172_s3 + $0x38] sm:$0xff]   ;;  %2474 = vmatprep.subr.bf16.mxu0 %v2707_v49  ;;  %v2710_v52 = vld [vmem:[%s3172_s3 + $0x30] sm:$0xff]   ;;  %v2712_v54 = vld [vmem:[%s3172_s3 + $0x28] sm:$0xff]  }
 0x170   : > { %2522 = vmatprep.subr.bf16.mxu1 %v2708_v50  ;;  %2475 = vmatpush3.bf16.msra.mxu0 %v2707_v49  ;;  %v2713_v55 = vld [vmem:[%s3173_s4 + $0x20] sm:$0xff]   ;;  %v2715_v57 = vld [vmem:[%s3173_s4 + $0x18] sm:$0xff]   ;;  %v2717_v59 = vld [vmem:[%s3173_s4 + $0x10] sm:$0xff]  }
 0x171   : > { %2523 = vmatpush3.bf16.msra.mxu1 %v2708_v50  ;;  %2476 = vmatprep.subr.bf16.mxu0 %v2709_v51  ;;  %v2714_v56 = vld [vmem:[%s3172_s3 + $0x20] sm:$0xff]   ;;  %v2716_v58 = vld [vmem:[%s3172_s3 + $0x18] sm:$0xff]   ;;  %v1142_v60 = vld [vmem:[#allocation2 + $0xb0] sm:$0xff] }
 0x172   : > { %2524 = vmatprep.subr.bf16.mxu1 %v2710_v52  ;;  %v1143_v61 = vld [vmem:[#allocation2] sm:$0xff]  ;;  %v2718_v62 = vld [vmem:[%s3172_s3 + $0x10] sm:$0xff]   ;;  %v2719_v1 = vld [vmem:[%s3173_s4 + $0x8] sm:$0xff]  }
 0x173   : > { %v1174_v63 = vpack.c.bf16 %v1143_v61, %v1142_v60  ;;  %v2723_v0 = vld [vmem:[%s2972_s18] sm:$0xff]   ;;  %v2720_v2 = vld [vmem:[%s3172_s3 + $0x8] sm:$0xff]   ;;  %v1144_v5 = vld [vmem:[#allocation2 + $0xd8] sm:$0xff] }
 0x174   : > { %2477 = vmatpush3.bf16.msra.mxu0 %v2709_v51  ;;  %2538 = vmatprep.mubr.bf16.mxu1 %v2723_v0  ;;  %v2721_v3 = vld [vmem:[%s3173_s4] sm:$0xff]   ;;  %v1145_v6 = vld [vmem:[#allocation2 + $0x18] sm:$0xff]  ;;  %v1146_v7 = vld [vmem:[#allocation2 + $0x50] sm:$0xff] }
 0x175   : > { %2525 = vmatpush3.bf16.msra.mxu1 %v2710_v52  ;;  %2478 = vmatprep.subr.bf16.mxu0 %v2711_v53  ;;  %v2722_v4 = vld [vmem:[%s3172_s3] sm:$0xff]   ;;  %v1147_v8 = vld [vmem:[#allocation2 + $0x68] sm:$0xff]  ;;  %v1175_v9 = vpack.c.bf16 %v1145_v6, %v1144_v5  ;;  %v2725_v12 = vld [vmem:[%s2972_s18 + $0x10] sm:$0xff]  }
 0x176   : > { %2526 = vmatprep.subr.bf16.mxu1 %v2712_v54  ;;  %2490 = vmatprep.mubr.bf16.mxu0 %v1174_v63  ;;  %v2724_v10 = vld [vmem:[%s2972_s18 + $0x8] sm:$0xff]   ;;  %v1176_v11 = vpack.c.bf16 %v1147_v8, %v1146_v7  ;;  %v1148_v13 = vld [vmem:[#allocation2 + $0x30] sm:$0xff]  ;;  %v1150_v15 = vld [vmem:[#allocation2 + $0x80] sm:$0xff] }
 0x177   : > { %v1149_v14 = vld [vmem:[#allocation2 + $0x48] sm:$0xff]  ;;  %v2726_v18 = vld [vmem:[%s2972_s18 + $0x18] sm:$0xff]   ;;  %v2727_v20 = vld [vmem:[%s2972_s18 + $0x20] sm:$0xff]  }
 0x178   : > { %2479 = vmatpush3.bf16.msra.mxu0 %v2711_v53  ;;  %v1151_v16 = vld [vmem:[#allocation2 + $0x88] sm:$0xff]  ;;  %v1177_v17 = vpack.c.bf16 %v1149_v14, %v1148_v13  ;;  %v1153_v22 = vld [vmem:[#allocation2 + $0xb8] sm:$0xff]  ;;  %v1154_v23 = vld [vmem:[#allocation2 + $0x60] sm:$0xff] }
 0x179   : > { %2527 = vmatpush3.bf16.msra.mxu1 %v2712_v54  ;;  %2480 = vmatprep.subr.bf16.mxu0 %v2713_v55  ;;  %v1178_v19 = vpack.c.bf16 %v1151_v16, %v1150_v15  ;;  %v1152_v21 = vld [vmem:[#allocation2 + $0xe8] sm:$0xff]  ;;  %v1155_v24 = vld [vmem:[#allocation2 + $0xf0] sm:$0xff]  ;;  %v1157_v30 = vld [vmem:[#allocation2 + $0x78] sm:$0xff] }
 0x17a   : > { %2528 = vmatprep.subr.bf16.mxu1 %v2714_v56  ;;  %v1179_v25 = vpack.c.bf16 %v1153_v22, %v1152_v21  ;;  %v2728_v26 = vld [vmem:[%s2972_s18 + $0x28] sm:$0xff]   ;;  %v1180_v27 = vpack.c.bf16 %v1155_v24, %v1154_v23  ;;  %v2729_v28 = vld [vmem:[%s2972_s18 + $0x30] sm:$0xff]   ;;  %v1158_v31 = vld [vmem:[#allocation2 + $0x38] sm:$0xff] }
 0x17b   : > { %v1156_v29 = vld [vmem:[#allocation2 + $0x8] sm:$0xff]  ;;  %v1159_v32 = vld [vmem:[#allocation2 + $0x58] sm:$0xff]  ;;  %v2731_v36 = vld [vmem:[%s2972_s18 + $0x40] sm:$0xff]  }
 0x17c   : > { %2481 = vmatpush3.bf16.msra.mxu0 %v2713_v55  ;;  %v1181_v33 = vpack.c.bf16 %v1157_v30, %v1156_v29  ;;  %v2730_v34 = vld [vmem:[%s2972_s18 + $0x38] sm:$0xff]   ;;  %v1182_v35 = vpack.c.bf16 %v1159_v32, %v1158_v31  ;;  %v1160_v37 = vld [vmem:[#allocation2 + $0x40] sm:$0xff]  ;;  %v1161_v38 = vld [vmem:[#allocation2 + $0xc8] sm:$0xff] }
 0x17d   : > { %2529 = vmatpush3.bf16.msra.mxu1 %v2714_v56  ;;  %2482 = vmatprep.subr.bf16.mxu0 %v2715_v57  ;;  %v1162_v39 = vld [vmem:[#allocation2 + $0xe0] sm:$0xff]  ;;  %v1163_v40 = vld [vmem:[#allocation2 + $0x90] sm:$0xff]  ;;  %v1183_v41 = vpack.c.bf16 %v1161_v38, %v1160_v37  ;;  %v2732_v42 = vld [vmem:[%s2972_s18 + $0x48] sm:$0xff]  }
 0x17e   : > { %2530 = vmatprep.subr.bf16.mxu1 %v2716_v58  ;;  %v1184_v43 = vpack.c.bf16 %v1163_v40, %v1162_v39  ;;  %v2733_v44 = vld [vmem:[%s2972_s18 + $0x50] sm:$0xff]   ;;  %v1165_v46 = vld [vmem:[#allocation2 + $0xc0] sm:$0xff]  ;;  %v1166_v47 = vld [vmem:[#allocation2 + $0xa8] sm:$0xff] }
 0x17f   : > { %v1164_v45 = vld [vmem:[#allocation2 + $0x70] sm:$0xff]  ;;  %v2734_v50 = vld [vmem:[%s2972_s18 + $0x58] sm:$0xff]   ;;  %v2735_v52 = vld [vmem:[%s2972_s18 + $0x60] sm:$0xff]  }
 0x180   : > { %2483 = vmatpush3.bf16.msra.mxu0 %v2715_v57  ;;  %v1167_v48 = vld [vmem:[#allocation2 + $0xd0] sm:$0xff]  ;;  %v1185_v49 = vpack.c.bf16 %v1165_v46, %v1164_v45  ;;  %v1169_v54 = vld [vmem:[#allocation2 + $0x28] sm:$0xff]  ;;  %v1170_v55 = vld [vmem:[#allocation2 + $0xa0] sm:$0xff] }
 0x181   : > { %2531 = vmatpush3.bf16.msra.mxu1 %v2716_v58  ;;  %2484 = vmatprep.subr.bf16.mxu0 %v2717_v59  ;;  %v1186_v51 = vpack.c.bf16 %v1167_v48, %v1166_v47  ;;  %v1168_v53 = vld [vmem:[#allocation2 + $0x10] sm:$0xff]  ;;  %v1171_v56 = vld [vmem:[#allocation2 + $0xf8] sm:$0xff]  ;;  %v2736_v58 = vld [vmem:[%s2972_s18 + $0x68] sm:$0xff]  }
 0x182   : > { %2532 = vmatprep.subr.bf16.mxu1 %v2718_v62  ;;  %v1187_v57 = vpack.c.bf16 %v1169_v54, %v1168_v53  ;;  %v2737_v60 = vld [vmem:[%s2972_s18 + $0x70] sm:$0xff]   ;;  %v1172_v61 = vld [vmem:[#allocation2 + $0x20] sm:$0xff]  ;;  %v2738_v0 = vld [vmem:[%s2972_s18 + $0x78] sm:$0xff]  }
 0x183   : > { %v3098_v5 = vld [vmem:[%s3174_s5] ss:$0 sm:$0xff] }
 0x184   : > { %2485 = vmatpush3.bf16.msra.mxu0 %v2717_v59  ;;  %v1188_v59 = vpack.c.bf16 %v1171_v56, %v1170_v55 }
 0x185   : > { %2533 = vmatpush3.bf16.msra.mxu1 %v2718_v62  ;;  %2486 = vmatprep.subr.bf16.mxu0 %v2719_v1  ;;  %v1173_v62 = vld [vmem:[#allocation2 + $0x98] sm:$0xff] }
 0x186   : > { %2534 = vmatprep.subr.bf16.mxu1 %v2720_v2  ;;  %v1189_v63 = vpack.c.bf16 %v1173_v62, %v1172_v61 }
 0x188   : > { %2487 = vmatpush3.bf16.msra.mxu0 %v2719_v1 }
 0x189   : > { %2535 = vmatpush3.bf16.msra.mxu1 %v2720_v2  ;;  %2488 = vmatprep.subr.bf16.mxu0 %v2721_v3 }
 0x18a   : > { %2536 = vmatprep.subr.bf16.mxu1 %v2722_v4 }
 0x18c   : > { %2489 = vmatpush3.bf16.msra.mxu0 %v2721_v3 }
 0x18d   : > { %2537 = vmatpush3.bf16.msra.mxu1 %v2722_v4 }
 0x18f   : > { %2491 = vmatmul.mubr.bf16.vlgmr.msra.gmra.mxu0 %v1175_v9 }
 0x190   : > { %2539 = vmatmul.mubr.bf16.vlgmr.msra.gmra.mxu1 %v2724_v10  ;;  %2494 = vmatprep.mubr.bf16.mxu0 %v1176_v11 }
 0x191   : > { %2542 = vmatprep.mubr.bf16.mxu1 %v2725_v12 }
 0x197   : > { %2495 = vmatmul.mubr.bf16.gmra.mxu0 %v1177_v17 }
 0x198   : > { %2543 = vmatmul.mubr.bf16.gmra.mxu1 %v2726_v18  ;;  %2498 = vmatprep.mubr.bf16.mxu0 %v1178_v19 }
 0x199   : > { %2546 = vmatprep.mubr.bf16.mxu1 %v2727_v20 }
 0x19f   : > { %2499 = vmatmul.mubr.bf16.gmra.mxu0 %v1179_v25 }
 0x1a0   : > { %2547 = vmatmul.mubr.bf16.gmra.mxu1 %v2728_v26  ;;  %2502 = vmatprep.mubr.bf16.mxu0 %v1180_v27 }
 0x1a1   : > { %2550 = vmatprep.mubr.bf16.mxu1 %v2729_v28 }
 0x1a7   : > { %2503 = vmatmul.mubr.bf16.gmra.mxu0 %v1181_v33 }
 0x1a8   : > { %2551 = vmatmul.mubr.bf16.gmra.mxu1 %v2730_v34  ;;  %2506 = vmatprep.mubr.bf16.mxu0 %v1182_v35 }
 0x1a9   : > { %2554 = vmatprep.mubr.bf16.mxu1 %v2731_v36 }
 0x1af   : > { %2507 = vmatmul.mubr.bf16.gmra.mxu0 %v1183_v41 }
 0x1b0   : > { %2555 = vmatmul.mubr.bf16.gmra.mxu1 %v2732_v42  ;;  %2510 = vmatprep.mubr.bf16.mxu0 %v1184_v43 }
 0x1b1   : > { %2558 = vmatprep.mubr.bf16.mxu1 %v2733_v44 }
 0x1b7   : > { %2511 = vmatmul.mubr.bf16.gmra.mxu0 %v1185_v49 }
 0x1b8   : > { %2559 = vmatmul.mubr.bf16.gmra.mxu1 %v2734_v50  ;;  %2514 = vmatprep.mubr.bf16.mxu0 %v1186_v51 }
 0x1b9   : > { %2562 = vmatprep.mubr.bf16.mxu1 %v2735_v52 }
 0x1bf   : > { %2515 = vmatmul.mubr.bf16.gmra.mxu0 %v1187_v57 }
 0x1c0   : > { %2563 = vmatmul.mubr.bf16.gmra.mxu1 %v2736_v58  ;;  %2518 = vmatprep.mubr.bf16.mxu0 %v1188_v59 }
 0x1c1   : > { %2566 = vmatprep.mubr.bf16.mxu1 %v2737_v60 }
 0x1c7   : > { %2519 = vmatmul.mubr.bf16.gmra.mxu0 %v1189_v63 }
 0x1c8   : > { %2567 = vmatmul.mubr.bf16.gmra.mxu1 %v2738_v0 }
 0x24f   : > { %v2492_v1 = vpop.f32.mrf.mxu0 }
 0x250   : > { %v2540_v2 = vpop.f32.mrf.mxu1 }
 0x251   : > { %v1602_v3 = vadd.f32 %v2540_v2, %v2492_v1  ;;  %v1288_v4 = vpop.f32.mrf.mxu0 }
 0x252   : > { %v1593_v6 = vpop.f32.mrf.mxu1 }
 0x253   : > { %v1594_v7 = vadd.f32 %v1593_v6, %v1288_v4  ;;  %v2493_v8 = vpop.f32.mrf.mxu0  ;;  %v1729_v10 = vadd.f32 %v3098_v5, %v1602_v3 }
 0x254   : > { %v2541_v9 = vpop.f32.mrf.mxu1 }
 0x255   : > { %v1605_v11 = vadd.f32 %v2541_v9, %v2493_v8  ;;  %v1291_v12 = vpop.f32.mrf.mxu0  ;;  %v1727_v14 = vadd.f32 %v3098_v5, %v1594_v7  ;;  %v1761_v19 = vmax.f32 %v1729_v10, 0.0 }
 0x256   : > { %v1596_v13 = vpop.f32.mrf.mxu1 }
 0x257   : > { %v1730_v15 = vadd.f32 %v3098_v5, %v1605_v11  ;;  %v1597_v16 = vadd.f32 %v1596_v13, %v1291_v12  ;;  %v2496_v17 = vpop.f32.mrf.mxu0  ;;  %v1759_v25 = vmax.f32 %v1727_v14, 0.0 }
 0x258   : > { %v2544_v18 = vpop.f32.mrf.mxu1 }
 0x259   : > { %v1762_v20 = vmax.f32 %v1730_v15, 0.0  ;;  %v1728_v21 = vadd.f32 %v3098_v5, %v1597_v16  ;;  %v1618_v22 = vadd.f32 %v2544_v18, %v2496_v17  ;;  %v1304_v23 = vpop.f32.mrf.mxu0 }
 0x25a   : > { %v1609_v24 = vpop.f32.mrf.mxu1 }
 0x25b   : > { %v2227_v26 = vpack.c.bf16 %v1762_v20, %v1761_v19  ;;  %v1760_v27 = vmax.f32 %v1728_v21, 0.0  ;;  %v1610_v28 = vadd.f32 %v1609_v24, %v1304_v23  ;;  %v2497_v29 = vpop.f32.mrf.mxu0  ;;  %v1733_v32 = vadd.f32 %v3098_v5, %v1618_v22 }
 0x25c   : > { %v2545_v30 = vpop.f32.mrf.mxu1 }
 0x25d   : > { %2299 = vst [vmem:[%s2977_s20 + $0x8] sm:$0xff] %v2227_v26   ;;  %v2222_v31 = vpack.c.bf16 %v1760_v27, %v1759_v25  ;;  %v1621_v33 = vadd.f32 %v2545_v30, %v2497_v29  ;;  %v1307_v34 = vpop.f32.mrf.mxu0  ;;  %v1731_v36 = vadd.f32 %v3098_v5, %v1610_v28  ;;  %v1765_v41 = vmax.f32 %v1733_v32, 0.0 }
 0x25e   : > { %v1612_v35 = vpop.f32.mrf.mxu1 }
 0x25f   : > { %2223 = vst [vmem:[%s2977_s20] sm:$0xff] %v2222_v31   ;;  %v1734_v37 = vadd.f32 %v3098_v5, %v1621_v33  ;;  %v1613_v38 = vadd.f32 %v1612_v35, %v1307_v34  ;;  %v2500_v39 = vpop.f32.mrf.mxu0  ;;  %v1763_v47 = vmax.f32 %v1731_v36, 0.0 }
 0x260   : > { %v2548_v40 = vpop.f32.mrf.mxu1 }
 0x261   : > { %v1766_v42 = vmax.f32 %v1734_v37, 0.0  ;;  %v1732_v43 = vadd.f32 %v3098_v5, %v1613_v38  ;;  %v1634_v44 = vadd.f32 %v2548_v40, %v2500_v39  ;;  %v1320_v45 = vpop.f32.mrf.mxu0 }
 0x262   : > { %v1625_v46 = vpop.f32.mrf.mxu1 }
 0x263   : > { %v2237_v48 = vpack.c.bf16 %v1766_v42, %v1765_v41  ;;  %v1764_v49 = vmax.f32 %v1732_v43, 0.0  ;;  %v1626_v50 = vadd.f32 %v1625_v46, %v1320_v45  ;;  %v2501_v51 = vpop.f32.mrf.mxu0  ;;  %v1737_v54 = vadd.f32 %v3098_v5, %v1634_v44 }
 0x264   : > { %v2549_v52 = vpop.f32.mrf.mxu1 }
 0x265   : > { %2301 = vst [vmem:[%s2977_s20 + $0x18] sm:$0xff] %v2237_v48   ;;  %v2232_v53 = vpack.c.bf16 %v1764_v49, %v1763_v47  ;;  %v1637_v55 = vadd.f32 %v2549_v52, %v2501_v51  ;;  %v1323_v56 = vpop.f32.mrf.mxu0  ;;  %v1735_v58 = vadd.f32 %v3098_v5, %v1626_v50  ;;  %v1769_v63 = vmax.f32 %v1737_v54, 0.0 }
 0x266   : > { %v1628_v57 = vpop.f32.mrf.mxu1 }
 0x267   : > { %2300 = vst [vmem:[%s2977_s20 + $0x10] sm:$0xff] %v2232_v53   ;;  %v1738_v59 = vadd.f32 %v3098_v5, %v1637_v55  ;;  %v1629_v60 = vadd.f32 %v1628_v57, %v1323_v56  ;;  %v2504_v61 = vpop.f32.mrf.mxu0  ;;  %v1767_v6 = vmax.f32 %v1735_v58, 0.0 }
 0x268   : > { %v2552_v62 = vpop.f32.mrf.mxu1 }
 0x269   : > { %v1770_v0 = vmax.f32 %v1738_v59, 0.0  ;;  %v1736_v1 = vadd.f32 %v3098_v5, %v1629_v60  ;;  %v1650_v2 = vadd.f32 %v2552_v62, %v2504_v61  ;;  %v1336_v3 = vpop.f32.mrf.mxu0 }
 0x26a   : > { %v1641_v4 = vpop.f32.mrf.mxu1 }
 0x26b   : > { %v2247_v7 = vpack.c.bf16 %v1770_v0, %v1769_v63  ;;  %v1768_v8 = vmax.f32 %v1736_v1, 0.0  ;;  %v1642_v9 = vadd.f32 %v1641_v4, %v1336_v3  ;;  %v2505_v10 = vpop.f32.mrf.mxu0  ;;  %v1741_v13 = vadd.f32 %v3098_v5, %v1650_v2 }
 0x26c   : > { %v2553_v11 = vpop.f32.mrf.mxu1 }
 0x26d   : > { %2303 = vst [vmem:[%s2977_s20 + $0x28] sm:$0xff] %v2247_v7   ;;  %v2242_v12 = vpack.c.bf16 %v1768_v8, %v1767_v6  ;;  %v1653_v14 = vadd.f32 %v2553_v11, %v2505_v10  ;;  %v1339_v15 = vpop.f32.mrf.mxu0  ;;  %v1739_v17 = vadd.f32 %v3098_v5, %v1642_v9  ;;  %v1773_v22 = vmax.f32 %v1741_v13, 0.0 }
 0x26e   : > { %v1644_v16 = vpop.f32.mrf.mxu1 }
 0x26f   : > { %2302 = vst [vmem:[%s2977_s20 + $0x20] sm:$0xff] %v2242_v12   ;;  %v1742_v18 = vadd.f32 %v3098_v5, %v1653_v14  ;;  %v1645_v19 = vadd.f32 %v1644_v16, %v1339_v15  ;;  %v2508_v20 = vpop.f32.mrf.mxu0  ;;  %v1771_v28 = vmax.f32 %v1739_v17, 0.0 }
 0x270   : > { %v2556_v21 = vpop.f32.mrf.mxu1 }
 0x271   : > { %v1774_v23 = vmax.f32 %v1742_v18, 0.0  ;;  %v1740_v24 = vadd.f32 %v3098_v5, %v1645_v19  ;;  %v1666_v25 = vadd.f32 %v2556_v21, %v2508_v20  ;;  %v1352_v26 = vpop.f32.mrf.mxu0 }
 0x272   : > { %v1657_v27 = vpop.f32.mrf.mxu1 }
 0x273   : > { %v2257_v29 = vpack.c.bf16 %v1774_v23, %v1773_v22  ;;  %v1772_v30 = vmax.f32 %v1740_v24, 0.0  ;;  %v1658_v31 = vadd.f32 %v1657_v27, %v1352_v26  ;;  %v2509_v32 = vpop.f32.mrf.mxu0  ;;  %v1745_v35 = vadd.f32 %v3098_v5, %v1666_v25 }
 0x274   : > { %v2557_v33 = vpop.f32.mrf.mxu1 }
 0x275   : > { %2305 = vst [vmem:[%s2977_s20 + $0x38] sm:$0xff] %v2257_v29   ;;  %v2252_v34 = vpack.c.bf16 %v1772_v30, %v1771_v28  ;;  %v1669_v36 = vadd.f32 %v2557_v33, %v2509_v32  ;;  %v1355_v37 = vpop.f32.mrf.mxu0  ;;  %v1743_v39 = vadd.f32 %v3098_v5, %v1658_v31  ;;  %v1777_v44 = vmax.f32 %v1745_v35, 0.0 }
 0x276   : > { %v1660_v38 = vpop.f32.mrf.mxu1 }
 0x277   : > { %2304 = vst [vmem:[%s2977_s20 + $0x30] sm:$0xff] %v2252_v34   ;;  %v1746_v40 = vadd.f32 %v3098_v5, %v1669_v36  ;;  %v1661_v41 = vadd.f32 %v1660_v38, %v1355_v37  ;;  %v2512_v42 = vpop.f32.mrf.mxu0  ;;  %v1775_v50 = vmax.f32 %v1743_v39, 0.0 }
 0x278   : > { %v2560_v43 = vpop.f32.mrf.mxu1 }
 0x279   : > { %v1778_v45 = vmax.f32 %v1746_v40, 0.0  ;;  %v1744_v46 = vadd.f32 %v3098_v5, %v1661_v41  ;;  %v1682_v47 = vadd.f32 %v2560_v43, %v2512_v42  ;;  %v1368_v48 = vpop.f32.mrf.mxu0 }
 0x27a   : > { %v1673_v49 = vpop.f32.mrf.mxu1 }
 0x27b   : > { %v2267_v51 = vpack.c.bf16 %v1778_v45, %v1777_v44  ;;  %v1776_v52 = vmax.f32 %v1744_v46, 0.0  ;;  %v1674_v53 = vadd.f32 %v1673_v49, %v1368_v48  ;;  %v2513_v54 = vpop.f32.mrf.mxu0  ;;  %v1749_v57 = vadd.f32 %v3098_v5, %v1682_v47 }
 0x27c   : > { %v2561_v55 = vpop.f32.mrf.mxu1 }
 0x27d   : > { %2307 = vst [vmem:[%s2977_s20 + $0x48] sm:$0xff] %v2267_v51   ;;  %v2262_v56 = vpack.c.bf16 %v1776_v52, %v1775_v50  ;;  %v1685_v58 = vadd.f32 %v2561_v55, %v2513_v54  ;;  %v1371_v59 = vpop.f32.mrf.mxu0  ;;  %v1747_v61 = vadd.f32 %v3098_v5, %v1674_v53  ;;  %v1781_v2 = vmax.f32 %v1749_v57, 0.0 }
 0x27e   : > { %v1676_v60 = vpop.f32.mrf.mxu1 }
 0x27f   : > { %2306 = vst [vmem:[%s2977_s20 + $0x40] sm:$0xff] %v2262_v56   ;;  %v1750_v62 = vadd.f32 %v3098_v5, %v1685_v58  ;;  %v1677_v63 = vadd.f32 %v1676_v60, %v1371_v59  ;;  %v2516_v0 = vpop.f32.mrf.mxu0  ;;  %v1779_v9 = vmax.f32 %v1747_v61, 0.0 }
 0x280   : > { %v2564_v1 = vpop.f32.mrf.mxu1 }
 0x281   : > { %v1782_v3 = vmax.f32 %v1750_v62, 0.0  ;;  %v1748_v4 = vadd.f32 %v3098_v5, %v1677_v63  ;;  %v1698_v6 = vadd.f32 %v2564_v1, %v2516_v0  ;;  %v1384_v7 = vpop.f32.mrf.mxu0 }
 0x282   : > { %v1689_v8 = vpop.f32.mrf.mxu1 }
 0x283   : > { %v2277_v10 = vpack.c.bf16 %v1782_v3, %v1781_v2  ;;  %v1780_v11 = vmax.f32 %v1748_v4, 0.0  ;;  %v1690_v12 = vadd.f32 %v1689_v8, %v1384_v7  ;;  %v2517_v13 = vpop.f32.mrf.mxu0  ;;  %v1753_v16 = vadd.f32 %v3098_v5, %v1698_v6 }
 0x284   : > { %v2565_v14 = vpop.f32.mrf.mxu1 }
 0x285   : > { %2309 = vst [vmem:[%s2977_s20 + $0x58] sm:$0xff] %v2277_v10   ;;  %v2272_v15 = vpack.c.bf16 %v1780_v11, %v1779_v9  ;;  %v1701_v17 = vadd.f32 %v2565_v14, %v2517_v13  ;;  %v1387_v18 = vpop.f32.mrf.mxu0  ;;  %v1751_v20 = vadd.f32 %v3098_v5, %v1690_v12  ;;  %v1785_v25 = vmax.f32 %v1753_v16, 0.0 }
 0x286   : > { %v1692_v19 = vpop.f32.mrf.mxu1 }
 0x287   : > { %2308 = vst [vmem:[%s2977_s20 + $0x50] sm:$0xff] %v2272_v15   ;;  %v1754_v21 = vadd.f32 %v3098_v5, %v1701_v17  ;;  %v1693_v22 = vadd.f32 %v1692_v19, %v1387_v18  ;;  %v2520_v23 = vpop.f32.mrf.mxu0  ;;  %v1783_v31 = vmax.f32 %v1751_v20, 0.0 }
 0x288   : > { %v2568_v24 = vpop.f32.mrf.mxu1 }
 0x289   : > { %v1786_v26 = vmax.f32 %v1754_v21, 0.0  ;;  %v1752_v27 = vadd.f32 %v3098_v5, %v1693_v22  ;;  %v1714_v28 = vadd.f32 %v2568_v24, %v2520_v23  ;;  %v1400_v29 = vpop.f32.mrf.mxu0 }
 0x28a   : > { %v1705_v30 = vpop.f32.mrf.mxu1 }
 0x28b   : > { %v2287_v32 = vpack.c.bf16 %v1786_v26, %v1785_v25  ;;  %v1784_v33 = vmax.f32 %v1752_v27, 0.0  ;;  %v1706_v34 = vadd.f32 %v1705_v30, %v1400_v29  ;;  %v2521_v35 = vpop.f32.mrf.mxu0  ;;  %v1757_v38 = vadd.f32 %v3098_v5, %v1714_v28 }
 0x28c   : > { %v2569_v36 = vpop.f32.mrf.mxu1 }
 0x28d   : > { %2311 = vst [vmem:[%s2977_s20 + $0x68] sm:$0xff] %v2287_v32   ;;  %v2282_v37 = vpack.c.bf16 %v1784_v33, %v1783_v31  ;;  %v1717_v39 = vadd.f32 %v2569_v36, %v2521_v35  ;;  %v1403_v40 = vpop.f32.mrf.mxu0  ;;  %v1755_v42 = vadd.f32 %v3098_v5, %v1706_v34  ;;  %v1789_v45 = vmax.f32 %v1757_v38, 0.0 }
 0x28e   : > { %v1708_v41 = vpop.f32.mrf.mxu1 }
 0x28f   : > { %2310 = vst [vmem:[%s2977_s20 + $0x60] sm:$0xff] %v2282_v37   ;;  %v1758_v43 = vadd.f32 %v3098_v5, %v1717_v39  ;;  %v1709_v44 = vadd.f32 %v1708_v41, %v1403_v40  ;;  %v1787_v48 = vmax.f32 %v1755_v42, 0.0 }
 0x291   : > { %v1790_v46 = vmax.f32 %v1758_v43, 0.0  ;;  %v1756_v47 = vadd.f32 %v3098_v5, %v1709_v44 }
 0x293   : > { %v2297_v49 = vpack.c.bf16 %v1790_v46, %v1789_v45  ;;  %v1788_v50 = vmax.f32 %v1756_v47, 0.0 }
 0x295   : > { %2313 = vst [vmem:[%s2977_s20 + $0x78] sm:$0xff] %v2297_v49   ;;  %v2292_v51 = vpack.c.bf16 %v1788_v50, %v1787_v48 }
 0x297   : > { %2312 = vst [vmem:[%s2977_s20 + $0x70] sm:$0xff] %v2292_v51  }
 0x298 PF: > { %s16_s27 = sadd.s32 1, %s2793_s27   ;;  %s3176_s21 = smov %s2773_s22 }
 0x299   : > { %p13_p0 = scmp.ge.s32.totalorder %s16_s27, 6   ;;  %s3177_s22 = smov %s2882_s10 }
 0x29a   : > { %s3178_s23 = smov %s2785_s25  ;;  %s3179_s24 = smov %s2789_s26 }
 0x29b   : > { %s3180_s25 = smov %s3183_s28  ;;  %s3181_s26 = smov %s3187_s29 }
 0x29c   :  { %15 = sbr.rel (!%p13_p0) target bundleno = 4 (0x4), region = 131 }

</bundles_post_ra>
